<compile_context>
chip_gen: v7x
topology: tpu7x:2x2x1
jax: 0.10.0
libtpu: 0.0.40
codegen_flags: <defaults>
</compile_context>

<pallas_src>
import functools

import numpy as np
import jax
import jax.numpy as jnp
from jax.experimental import pallas as pl
from jax.experimental.pallas import tpu as pltpu


F_PAD = 128        # lane-dense feature padding (multiple of 128 lanes)
VEC_ROWS = 16      # packed parameter-vector buffer rows (multiple of 8)

# Row indices inside the packed (VEC_ROWS, F_PAD) parameter-vector buffer.
(TEXT_B, TEXT_LN_G, TEXT_LN_B,
 GCN1_B, GCN2_B, GCN3_B,
 MOL1_B, MOL2_B, MOL3_B,
 MOL_LN_G, MOL_LN_B,
 SIA_B, BN_W, BN_B, TEMP_ROW) = range(15)

# Plane indices inside the packed (8, F_PAD, F_PAD) weight buffer.
(W_TEXT, W_GCN1, W_GCN2, W_GCN3, W_MOL1, W_MOL2, W_MOL3, W_SIA) = range(8)


def _round_up(x, m):
    return (x + m - 1) // m * m


def _pad2d(a, rows, cols, dtype):
    r, c = a.shape
    return jnp.pad(a.astype(jnp.float32), ((0, rows - r), (0, cols - c))).astype(dtype)


# ---------------------------------------------------------------- kernel ----

def _fused_forward_kernel(acts_ref, adjpool_ref, w_ref, vecs_ref, out_ref,
                          *, bp, npad, b_true, nout):
    f32, bf16 = jnp.float32, jnp.bfloat16
    V = vecs_ref[...]                            # (16, 128) packed param vectors
    row = lambda i: V[i:i + 1, :]                # (1, 128), broadcasts over rows

    # exp(temp) computed in-kernel (EUP transcendental slot is otherwise idle).
    et = jnp.exp(V[TEMP_ROW:TEMP_ROW + 1, 0:1])                 # (1, 1)

    dot = lambda a, b: jnp.dot(a, b, preferred_element_type=f32)  # bf16 in, f32 acc
    tobf = lambda x: x.astype(bf16)

    # Unpack the two concatenated activation operands with static slices.
    text = acts_ref[0:bp, :]                     # (BP, 128)  bf16
    nodex = acts_ref[bp:bp + npad, :]            # (NP, 128)  bf16
    adj = adjpool_ref[0:npad, :]                 # (NP, NP)   bf16 (loaded ONCE)
    pool = adjpool_ref[npad:npad + bp, :]        # (BP, NP)   bf16
    w = lambda i: w_ref[i]                       # (128, 128) bf16

    # Feature mask: 1.0 for the true `nout` feature lanes, 0.0 for padding.
    fmask = (jax.lax.broadcasted_iota(jnp.int32, (1, F_PAD), 1)
             < nout).astype(f32)
    inv_n = 1.0 / float(nout)

    def layer_norm_scale(x, gamma, beta):
        # Padded feature lanes of x are exactly zero (zero-padded weights and
        # biases), so the full-lane sum equals the sum over the true features;
        # variance uses the feature mask.
        mean = jnp.sum(x, axis=-1, keepdims=True) * inv_n
        d = x - mean
        var = jnp.sum(d * d * fmask, axis=-1, keepdims=True) * inv_n
        return (d * jax.lax.rsqrt(var + 1e-5) * gamma + beta) * et

    # ---- text branch: Linear -> LayerNorm -> * exp(temp) -------------------
    t = dot(text, w(W_TEXT)) + row(TEXT_B)
    text_x = layer_norm_scale(t, row(TEXT_LN_G), row(TEXT_LN_B))

    # ---- graph branch: 3x GCNConv, adjacency reused for all layers ---------
    h = jnp.maximum(dot(adj, tobf(dot(nodex, w(W_GCN1)))) + row(GCN1_B), 0.0)
    h = jnp.maximum(dot(adj, tobf(dot(tobf(h), w(W_GCN2)))) + row(GCN2_B), 0.0)
    node_reps = dot(adj, tobf(dot(tobf(h), w(W_GCN3)))) + row(GCN3_B)
    pooled = dot(pool, tobf(node_reps))          # global mean pool

    # ---- graph_proj_head -> LayerNorm -> * exp(temp) -----------------------
    g = jnp.maximum(dot(tobf(pooled), w(W_MOL1)) + row(MOL1_B), 0.0)
    g = jnp.maximum(dot(tobf(g), w(W_MOL2)) + row(MOL2_B), 0.0)
    g = dot(tobf(g), w(W_MOL3)) + row(MOL3_B)
    mol_x = layer_norm_scale(g, row(MOL_LN_G), row(MOL_LN_B))

    # ---- shared fc_sia (Linear + BatchNorm1d(train) + Tanh) + L2 norm ------
    # Training-mode BatchNorm semantics (batch statistics, biased variance),
    # matching the PyTorch module which is constructed in .train() mode.
    rmask = (jax.lax.broadcasted_iota(jnp.int32, (bp, 1), 0)
             < b_true).astype(f32)               # exclude padded batch rows
    inv_b = 1.0 / float(b_true)
    sia_w = w(W_SIA)
    sia_b, bn_w, bn_b = row(SIA_B), row(BN_W), row(BN_B)

    def fc_sia_norm(x):
        y = dot(tobf(x), sia_w) + sia_b
        mu = jnp.sum(y * rmask, axis=0, keepdims=True) * inv_b
        d = y - mu
        var = jnp.sum(d * d * rmask, axis=0, keepdims=True) * inv_b   # biased
        z = d * jax.lax.rsqrt(var + 1e-5) * bn_w + bn_b
        th = jnp.tanh(z)
        l2 = jnp.maximum(jnp.sqrt(jnp.sum(th * th, axis=-1, keepdims=True)),
                         1e-12)
        return th / l2

    # Single packed output buffer (one lane-dense output DMA).
    out_ref[0 * bp:1 * bp, :] = fc_sia_norm(text_x)
    out_ref[1 * bp:2 * bp, :] = fc_sia_norm(mol_x)
    out_ref[2 * bp:3 * bp, :] = text_x
    out_ref[3 * bp:4 * bp, :] = mol_x


# ------------------------------------------------------------------ glue ----

def pack_params(params):
    """One-time parameter padding/packing (hoisted out of the forward path)."""
    f32 = jnp.float32

    def wpad(name):
        w = params[name].astype(f32)
        r, c = w.shape
        return jnp.pad(w, ((0, F_PAD - r), (0, F_PAD - c)))

    w_packed = jnp.stack([wpad("text_w"), wpad("gcn1_w"), wpad("gcn2_w"),
                          wpad("gcn3_w"), wpad("mol1_w"), wpad("mol2_w"),
                          wpad("mol3_w"), wpad("sia_w")]).astype(jnp.bfloat16)

    vec_entries = [
        (TEXT_B, params["text_b"]), (TEXT_LN_G, params["text_ln_g"]),
        (TEXT_LN_B, params["text_ln_b"]),
        (GCN1_B, params["gcn1_b"]), (GCN2_B, params["gcn2_b"]),
        (GCN3_B, params["gcn3_b"]),
        (MOL1_B, params["mol1_b"]), (MOL2_B, params["mol2_b"]),
        (MOL3_B, params["mol3_b"]),
        (MOL_LN_G, params["mol_ln_g"]), (MOL_LN_B, params["mol_ln_b"]),
        (SIA_B, params["sia_b"]), (BN_W, params["bn_w"]), (BN_B, params["bn_b"]),
    ]
    vecs = jnp.zeros((VEC_ROWS, F_PAD), f32)
    for idx, v in vec_entries:
        vecs = vecs.at[idx, : v.shape[0]].set(v.astype(f32))
    vecs = vecs.at[TEMP_ROW, 0].set(jnp.asarray(params["temp"], f32))
    return {"w": w_packed, "vecs": vecs, "nout": int(params["text_w"].shape[1])}


@functools.partial(jax.jit, static_argnames=("nout",))
def gcn_gan_forward(w_packed, vecs, text_pooled, node_x, adj_norm, pool_mat,
                    *, nout):
    f32, bf16 = jnp.float32, jnp.bfloat16
    B = text_pooled.shape[0]
    N = node_x.shape[0]

    BP = _round_up(B, 16)       # batch rows -> bf16 sublane tile (16)
    NP = _round_up(N, 128)      # node dim is a lane dim of adj / pool_mat

    # Per-call activation padding + packing into two lane-dense bf16 operands.
    acts_p = jnp.concatenate([_pad2d(text_pooled, BP, F_PAD, bf16),
                              _pad2d(node_x, NP, F_PAD, bf16)], axis=0)
    adjpool_p = jnp.concatenate([_pad2d(adj_norm, NP, NP, bf16),
                                 _pad2d(pool_mat, BP, NP, bf16)], axis=0)

    kern = functools.partial(_fused_forward_kernel, bp=BP, npad=NP,
                             b_true=B, nout=nout)

    nbytes = lambda a: int(a.size) * a.dtype.itemsize
    out_bytes = 4 * BP * F_PAD * 4
    vmem_bytes = 2 * (nbytes(acts_p) + nbytes(adjpool_p) + nbytes(w_packed)
                      + nbytes(vecs) + out_bytes) + (4 << 20)   # headroom

    # Grid-less call: every operand is a whole-array VMEM block.
    out = pl.pallas_call(
        kern,
        out_shape=jax.ShapeDtypeStruct((4 * BP, F_PAD), f32),
        compiler_params=pltpu.CompilerParams(vmem_limit_bytes=int(vmem_bytes)),
    )(acts_p, adjpool_p, w_packed, vecs)

    fc_text = out[0 * BP:0 * BP + B, :nout]
    fc_mol = out[1 * BP:1 * BP + B, :nout]
    text_x = out[2 * BP:2 * BP + B, :nout]
    mol_x = out[3 * BP:3 * BP + B, :nout]
    return fc_text, fc_mol, text_x, mol_x


def build_norm_adj(edge_index, num_nodes):
    """Dense GCN-normalized adjacency: D^-1/2 (A + I) D^-1/2 (gcn_norm)."""
    A = jnp.zeros((num_nodes, num_nodes), jnp.float32)
    A = A.at[edge_index[1], edge_index[0]].add(1.0)   # duplicate edges sum
    A = A + jnp.eye(num_nodes, dtype=jnp.float32)
    deg = A.sum(axis=1)
    dinv = jax.lax.rsqrt(jnp.maximum(deg, 1e-12))
    return A * dinv[:, None] * dinv[None, :]


def build_mean_pool_matrix(batch, num_graphs):
    """P[b, n] = 1/|graph b| if node n belongs to graph b (global_mean_pool)."""
    onehot = (batch[None, :] == jnp.arange(num_graphs)[:, None]).astype(jnp.float32)
    counts = jnp.maximum(onehot.sum(axis=1, keepdims=True), 1.0)
    return onehot / counts


def init_params(key, num_node_features, ninp, nout, nhid, ghc):
    ks = jax.random.split(key, 10)

    def lin(k, fin, fout):
        w = jax.random.normal(k, (fin, fout), jnp.float32) / jnp.sqrt(jnp.float32(fin))
        b = jnp.zeros((fout,), jnp.float32)
        return w, b

    p = {"temp": jnp.float32(0.07)}
    p["text_w"], p["text_b"] = lin(ks[0], ninp, nout)
    p["text_ln_g"] = jnp.ones((nout,), jnp.float32)
    p["text_ln_b"] = jnp.zeros((nout,), jnp.float32)
    p["gcn1_w"], p["gcn1_b"] = lin(ks[1], num_node_features, ghc)
    p["gcn2_w"], p["gcn2_b"] = lin(ks[2], ghc, ghc)
    p["gcn3_w"], p["gcn3_b"] = lin(ks[3], ghc, ghc)
    p["mol1_w"], p["mol1_b"] = lin(ks[4], ghc, nhid)
    p["mol2_w"], p["mol2_b"] = lin(ks[5], nhid, nhid)
    p["mol3_w"], p["mol3_b"] = lin(ks[6], nhid, nout)
    p["mol_ln_g"] = jnp.ones((nout,), jnp.float32)
    p["mol_ln_b"] = jnp.zeros((nout,), jnp.float32)
    p["sia_w"], p["sia_b"] = lin(ks[7], nout, nout)
    p["bn_w"] = jnp.ones((nout,), jnp.float32)
    p["bn_b"] = jnp.zeros((nout,), jnp.float32)
    return p


def reference_forward(params, text_pooled, node_x, adj_norm, pool_mat):
    """Pure-JAX f32 reference with PyTorch semantics (for correctness check)."""
    hp = jax.lax.Precision.HIGHEST
    d = lambda a, b: jnp.dot(a, b, precision=hp)

    def ln(x, g, b):
        m = x.mean(-1, keepdims=True)
        v = ((x - m) ** 2).mean(-1, keepdims=True)
        return (x - m) / jnp.sqrt(v + 1e-5) * g + b

    et = jnp.exp(params["temp"])
    t = d(text_pooled, params["text_w"]) + params["text_b"]
    text_x = ln(t, params["text_ln_g"], params["text_ln_b"]) * et

    h = jax.nn.relu(d(adj_norm, d(node_x, params["gcn1_w"])) + params["gcn1_b"])
    h = jax.nn.relu(d(adj_norm, d(h, params["gcn2_w"])) + params["gcn2_b"])
    nr = d(adj_norm, d(h, params["gcn3_w"])) + params["gcn3_b"]
    pooled = d(pool_mat, nr)
    g = jax.nn.relu(d(pooled, params["mol1_w"]) + params["mol1_b"])
    g = jax.nn.relu(d(g, params["mol2_w"]) + params["mol2_b"])
    g = d(g, params["mol3_w"]) + params["mol3_b"]
    x = ln(g, params["mol_ln_g"], params["mol_ln_b"]) * et

    def fc_sia_norm(z):
        y = d(z, params["sia_w"]) + params["sia_b"]
        mu = y.mean(0, keepdims=True)
        var = ((y - mu) ** 2).mean(0, keepdims=True)     # biased (training mode)
        zz = (y - mu) / jnp.sqrt(var + 1e-5) * params["bn_w"] + params["bn_b"]
        th = jnp.tanh(zz)
        n = jnp.maximum(jnp.sqrt((th * th).sum(-1, keepdims=True)), 1e-12)
        return th / n

    return fc_sia_norm(text_x), fc_sia_norm(x), text_x, x


if __name__ == "__main__":
    key = jax.random.PRNGKey(0)

    # small, forward-consistent shapes
    num_node_features, ninp, nout, nhid, ghc = 8, 32, 16, 32, 16
    B = 2                       # graphs / texts in the batch
    nodes_per_graph = 8
    N = B * nodes_per_graph     # total nodes

    k_text, k_nodes, k_params = jax.random.split(key, 3)

    # stand-in for BERT pooler_output
    text_pooled = jax.random.normal(k_text, (B, ninp), jnp.float32)
    # node feature matrix (graph_batch.x)
    node_x = jax.random.normal(k_nodes, (N, num_node_features), jnp.float32)

    # graph_batch.edge_index: ring graph inside each molecule, both directions
    src, dst = [], []
    for gidx in range(B):
        off = gidx * nodes_per_graph
        for i in range(nodes_per_graph):
            j = (i + 1) % nodes_per_graph
            src += [off + i, off + j]
            dst += [off + j, off + i]
    edge_index = jnp.array(np.stack([src, dst]), jnp.int32)

    # graph_batch.batch
    batch = jnp.array(
        np.concatenate([np.full(nodes_per_graph, g) for g in range(B)]), jnp.int32)

    adj_norm = build_norm_adj(edge_index, N)
    pool_mat = build_mean_pool_matrix(batch, B)

    params = init_params(k_params, num_node_features, ninp, nout, nhid, ghc)
    packed = pack_params(params)          # one-time padding/packing

    outs = gcn_gan_forward(packed["w"], packed["vecs"],
                           text_pooled, node_x, adj_norm, pool_mat,
                           nout=packed["nout"])
    outs = jax.block_until_ready(outs)

    fc_text, fc_mol, text_x, x = outs
    assert fc_text.shape == (B, nout) and fc_mol.shape == (B, nout)
    assert text_x.shape == (B, nout) and x.shape == (B, nout)

    # correctness check against a pure-JAX f32 reference; tolerance loosened
    # because the kernel uses bf16 MXU operands with f32 accumulation.
    refs = reference_forward(params, text_pooled, node_x, adj_norm, pool_mat)
    for got, want in zip(outs, refs):
        np.testing.assert_allclose(np.asarray(got), np.asarray(want),
                                   rtol=3e-2, atol=3e-2)

    print("KERNEL_OK")
</pallas_src>

<mosaic_0001>
module attributes {stable_mosaic.version = 11 : i64} {
  func.func @_fused_forward_kernel(%arg0: memref<144x128xbf16, #tpu.memory_space<vmem>>, %arg1: memref<144x128xbf16, #tpu.memory_space<vmem>>, %arg2: memref<8x128x128xbf16, #tpu.memory_space<vmem>>, %arg3: memref<16x128xf32, #tpu.memory_space<vmem>>, %arg4: memref<64x128xf32, #tpu.memory_space<vmem>>) attributes {dimension_semantics = [], scalar_prefetch = 0 : i64, scratch_operands = 0 : i64, tpu.core_type = #tpu.core_type<tc>} {
    %c0 = arith.constant 0 : index
    %c0_0 = arith.constant 0 : index
    %0 = vector.load %arg3[%c0, %c0_0] : memref<16x128xf32, #tpu.memory_space<vmem>>, vector<16x128xf32>
    %1 = vector.extract_strided_slice %0 {offsets = [14, 0], sizes = [1, 1], strides = [1, 1]} : vector<16x128xf32> to vector<1x1xf32>
    %2 = math.exp %1 : vector<1x1xf32>
    %c0_1 = arith.constant 0 : index
    %c0_2 = arith.constant 0 : index
    %3 = vector.load %arg0[%c0_1, %c0_2] : memref<144x128xbf16, #tpu.memory_space<vmem>>, vector<16x128xbf16>
    %c16 = arith.constant 16 : index
    %c0_3 = arith.constant 0 : index
    %4 = vector.load %arg0[%c16, %c0_3] : memref<144x128xbf16, #tpu.memory_space<vmem>>, vector<128x128xbf16>
    %c0_4 = arith.constant 0 : index
    %c0_5 = arith.constant 0 : index
    %5 = vector.load %arg1[%c0_4, %c0_5] : memref<144x128xbf16, #tpu.memory_space<vmem>>, vector<128x128xbf16>
    %c128 = arith.constant 128 : index
    %c0_6 = arith.constant 0 : index
    %6 = vector.load %arg1[%c128, %c0_6] : memref<144x128xbf16, #tpu.memory_space<vmem>>, vector<16x128xbf16>
    %7 = tpu.iota {dimensions = array<i32: 1>} : vector<1x128xi32>
    %c16_i32 = arith.constant 16 : i32
    %8 = vector.broadcast %c16_i32 : i32 to vector<1x128xi32>
    %9 = arith.cmpi slt, %7, %8 : vector<1x128xi32>
    %10 = arith.extui %9 : vector<1x128xi1> to vector<1x128xi32>
    %11 = arith.sitofp %10 : vector<1x128xi32> to vector<1x128xf32>
    %c0_7 = arith.constant 0 : index
    %c0_8 = arith.constant 0 : index
    %c0_9 = arith.constant 0 : index
    %12 = vector.load %arg2[%c0_7, %c0_8, %c0_9] : memref<8x128x128xbf16, #tpu.memory_space<vmem>>, vector<1x128x128xbf16>
    %13 = vector.shape_cast %12 : vector<1x128x128xbf16> to vector<128x128xbf16>
    %cst = arith.constant dense<0.000000e+00> : vector<16x128xf32>
    %14 = tpu.matmul %3, %13, %cst {dimension_numbers = #tpu.dot_dimension_numbers<[1], [0], [0], [1], [0, 0, 1, 1], [], []>} : vector<16x128xbf16>, vector<128x128xbf16>, vector<16x128xf32> -> vector<16x128xf32>
    %15 = vector.extract_strided_slice %0 {offsets = [0, 0], sizes = [1, 128], strides = [1, 1]} : vector<16x128xf32> to vector<1x128xf32>
    %16 = vector.broadcast %15 : vector<1x128xf32> to vector<16x128xf32>
    %17 = arith.addf %14, %16 : vector<16x128xf32>
    %18 = vector.extract_strided_slice %0 {offsets = [1, 0], sizes = [1, 128], strides = [1, 1]} : vector<16x128xf32> to vector<1x128xf32>
    %19 = vector.extract_strided_slice %0 {offsets = [2, 0], sizes = [1, 128], strides = [1, 1]} : vector<16x128xf32> to vector<1x128xf32>
    %cst_10 = arith.constant dense<0.000000e+00> : vector<16xf32>
    %20 = vector.multi_reduction <add>, %17, %cst_10 [1] : vector<16x128xf32> to vector<16xf32>
    %21 = vector.shape_cast %20 : vector<16xf32> to vector<16x1xf32>
    %cst_11 = arith.constant 6.250000e-02 : f32
    %22 = vector.broadcast %cst_11 : f32 to vector<16x1xf32>
    %23 = arith.mulf %21, %22 : vector<16x1xf32>
    %24 = vector.broadcast %23 : vector<16x1xf32> to vector<16x128xf32>
    %25 = arith.subf %17, %24 : vector<16x128xf32>
    %26 = arith.mulf %25, %25 : vector<16x128xf32>
    %27 = vector.broadcast %11 : vector<1x128xf32> to vector<16x128xf32>
    %28 = arith.mulf %26, %27 : vector<16x128xf32>
    %cst_12 = arith.constant dense<0.000000e+00> : vector<16xf32>
    %29 = vector.multi_reduction <add>, %28, %cst_12 [1] : vector<16x128xf32> to vector<16xf32>
    %30 = vector.shape_cast %29 : vector<16xf32> to vector<16x1xf32>
    %cst_13 = arith.constant 6.250000e-02 : f32
    %31 = vector.broadcast %cst_13 : f32 to vector<16x1xf32>
    %32 = arith.mulf %30, %31 : vector<16x1xf32>
    %cst_14 = arith.constant 9.99999974E-6 : f32
    %33 = vector.broadcast %cst_14 : f32 to vector<16x1xf32>
    %34 = arith.addf %32, %33 : vector<16x1xf32>
    %35 = math.rsqrt %34 : vector<16x1xf32>
    %36 = vector.broadcast %35 : vector<16x1xf32> to vector<16x128xf32>
    %37 = arith.mulf %25, %36 : vector<16x128xf32>
    %38 = vector.broadcast %18 : vector<1x128xf32> to vector<16x128xf32>
    %39 = arith.mulf %37, %38 : vector<16x128xf32>
    %40 = vector.broadcast %19 : vector<1x128xf32> to vector<16x128xf32>
    %41 = arith.addf %39, %40 : vector<16x128xf32>
    %42 = vector.broadcast %2 : vector<1x1xf32> to vector<16x128xf32>
    %43 = arith.mulf %41, %42 : vector<16x128xf32>
    %c1 = arith.constant 1 : index
    %c0_15 = arith.constant 0 : index
    %c0_16 = arith.constant 0 : index
    %44 = vector.load %arg2[%c1, %c0_15, %c0_16] : memref<8x128x128xbf16, #tpu.memory_space<vmem>>, vector<1x128x128xbf16>
    %45 = vector.shape_cast %44 : vector<1x128x128xbf16> to vector<128x128xbf16>
    %cst_17 = arith.constant dense<0.000000e+00> : vector<128x128xf32>
    %46 = tpu.matmul %4, %45, %cst_17 {dimension_numbers = #tpu.dot_dimension_numbers<[1], [0], [0], [1], [0, 0, 1, 1], [], []>} : vector<128x128xbf16>, vector<128x128xbf16>, vector<128x128xf32> -> vector<128x128xf32>
    %47 = arith.truncf %46 : vector<128x128xf32> to vector<128x128xbf16>
    %cst_18 = arith.constant dense<0.000000e+00> : vector<128x128xf32>
    %48 = tpu.matmul %5, %47, %cst_18 {dimension_numbers = #tpu.dot_dimension_numbers<[1], [0], [0], [1], [0, 0, 1, 1], [], []>} : vector<128x128xbf16>, vector<128x128xbf16>, vector<128x128xf32> -> vector<128x128xf32>
    %49 = vector.extract_strided_slice %0 {offsets = [3, 0], sizes = [1, 128], strides = [1, 1]} : vector<16x128xf32> to vector<1x128xf32>
    %50 = vector.broadcast %49 : vector<1x128xf32> to vector<128x128xf32>
    %51 = arith.addf %48, %50 : vector<128x128xf32>
    %cst_19 = arith.constant 0.000000e+00 : f32
    %52 = vector.broadcast %cst_19 : f32 to vector<128x128xf32>
    %53 = arith.maximumf %51, %52 : vector<128x128xf32>
    %54 = arith.truncf %53 : vector<128x128xf32> to vector<128x128xbf16>
    %c2 = arith.constant 2 : index
    %c0_20 = arith.constant 0 : index
    %c0_21 = arith.constant 0 : index
    %55 = vector.load %arg2[%c2, %c0_20, %c0_21] : memref<8x128x128xbf16, #tpu.memory_space<vmem>>, vector<1x128x128xbf16>
    %56 = vector.shape_cast %55 : vector<1x128x128xbf16> to vector<128x128xbf16>
    %cst_22 = arith.constant dense<0.000000e+00> : vector<128x128xf32>
    %57 = tpu.matmul %54, %56, %cst_22 {dimension_numbers = #tpu.dot_dimension_numbers<[1], [0], [0], [1], [0, 0, 1, 1], [], []>} : vector<128x128xbf16>, vector<128x128xbf16>, vector<128x128xf32> -> vector<128x128xf32>
    %58 = arith.truncf %57 : vector<128x128xf32> to vector<128x128xbf16>
    %cst_23 = arith.constant dense<0.000000e+00> : vector<128x128xf32>
    %59 = tpu.matmul %5, %58, %cst_23 {dimension_numbers = #tpu.dot_dimension_numbers<[1], [0], [0], [1], [0, 0, 1, 1], [], []>} : vector<128x128xbf16>, vector<128x128xbf16>, vector<128x128xf32> -> vector<128x128xf32>
    %60 = vector.extract_strided_slice %0 {offsets = [4, 0], sizes = [1, 128], strides = [1, 1]} : vector<16x128xf32> to vector<1x128xf32>
    %61 = vector.broadcast %60 : vector<1x128xf32> to vector<128x128xf32>
    %62 = arith.addf %59, %61 : vector<128x128xf32>
    %cst_24 = arith.constant 0.000000e+00 : f32
    %63 = vector.broadcast %cst_24 : f32 to vector<128x128xf32>
    %64 = arith.maximumf %62, %63 : vector<128x128xf32>
    %65 = arith.truncf %64 : vector<128x128xf32> to vector<128x128xbf16>
    %c3 = arith.constant 3 : index
    %c0_25 = arith.constant 0 : index
    %c0_26 = arith.constant 0 : index
    %66 = vector.load %arg2[%c3, %c0_25, %c0_26] : memref<8x128x128xbf16, #tpu.memory_space<vmem>>, vector<1x128x128xbf16>
    %67 = vector.shape_cast %66 : vector<1x128x128xbf16> to vector<128x128xbf16>
    %cst_27 = arith.constant dense<0.000000e+00> : vector<128x128xf32>
    %68 = tpu.matmul %65, %67, %cst_27 {dimension_numbers = #tpu.dot_dimension_numbers<[1], [0], [0], [1], [0, 0, 1, 1], [], []>} : vector<128x128xbf16>, vector<128x128xbf16>, vector<128x128xf32> -> vector<128x128xf32>
    %69 = arith.truncf %68 : vector<128x128xf32> to vector<128x128xbf16>
    %cst_28 = arith.constant dense<0.000000e+00> : vector<128x128xf32>
    %70 = tpu.matmul %5, %69, %cst_28 {dimension_numbers = #tpu.dot_dimension_numbers<[1], [0], [0], [1], [0, 0, 1, 1], [], []>} : vector<128x128xbf16>, vector<128x128xbf16>, vector<128x128xf32> -> vector<128x128xf32>
    %71 = vector.extract_strided_slice %0 {offsets = [5, 0], sizes = [1, 128], strides = [1, 1]} : vector<16x128xf32> to vector<1x128xf32>
    %72 = vector.broadcast %71 : vector<1x128xf32> to vector<128x128xf32>
    %73 = arith.addf %70, %72 : vector<128x128xf32>
    %74 = arith.truncf %73 : vector<128x128xf32> to vector<128x128xbf16>
    %cst_29 = arith.constant dense<0.000000e+00> : vector<16x128xf32>
    %75 = tpu.matmul %6, %74, %cst_29 {dimension_numbers = #tpu.dot_dimension_numbers<[1], [0], [0], [1], [0, 0, 1, 1], [], []>} : vector<16x128xbf16>, vector<128x128xbf16>, vector<16x128xf32> -> vector<16x128xf32>
    %76 = arith.truncf %75 : vector<16x128xf32> to vector<16x128xbf16>
    %c4 = arith.constant 4 : index
    %c0_30 = arith.constant 0 : index
    %c0_31 = arith.constant 0 : index
    %77 = vector.load %arg2[%c4, %c0_30, %c0_31] : memref<8x128x128xbf16, #tpu.memory_space<vmem>>, vector<1x128x128xbf16>
    %78 = vector.shape_cast %77 : vector<1x128x128xbf16> to vector<128x128xbf16>
    %cst_32 = arith.constant dense<0.000000e+00> : vector<16x128xf32>
    %79 = tpu.matmul %76, %78, %cst_32 {dimension_numbers = #tpu.dot_dimension_numbers<[1], [0], [0], [1], [0, 0, 1, 1], [], []>} : vector<16x128xbf16>, vector<128x128xbf16>, vector<16x128xf32> -> vector<16x128xf32>
    %80 = vector.extract_strided_slice %0 {offsets = [6, 0], sizes = [1, 128], strides = [1, 1]} : vector<16x128xf32> to vector<1x128xf32>
    %81 = vector.broadcast %80 : vector<1x128xf32> to vector<16x128xf32>
    %82 = arith.addf %79, %81 : vector<16x128xf32>
    %cst_33 = arith.constant 0.000000e+00 : f32
    %83 = vector.broadcast %cst_33 : f32 to vector<16x128xf32>
    %84 = arith.maximumf %82, %83 : vector<16x128xf32>
    %85 = arith.truncf %84 : vector<16x128xf32> to vector<16x128xbf16>
    %c5 = arith.constant 5 : index
    %c0_34 = arith.constant 0 : index
    %c0_35 = arith.constant 0 : index
    %86 = vector.load %arg2[%c5, %c0_34, %c0_35] : memref<8x128x128xbf16, #tpu.memory_space<vmem>>, vector<1x128x128xbf16>
    %87 = vector.shape_cast %86 : vector<1x128x128xbf16> to vector<128x128xbf16>
    %cst_36 = arith.constant dense<0.000000e+00> : vector<16x128xf32>
    %88 = tpu.matmul %85, %87, %cst_36 {dimension_numbers = #tpu.dot_dimension_numbers<[1], [0], [0], [1], [0, 0, 1, 1], [], []>} : vector<16x128xbf16>, vector<128x128xbf16>, vector<16x128xf32> -> vector<16x128xf32>
    %89 = vector.extract_strided_slice %0 {offsets = [7, 0], sizes = [1, 128], strides = [1, 1]} : vector<16x128xf32> to vector<1x128xf32>
    %90 = vector.broadcast %89 : vector<1x128xf32> to vector<16x128xf32>
    %91 = arith.addf %88, %90 : vector<16x128xf32>
    %cst_37 = arith.constant 0.000000e+00 : f32
    %92 = vector.broadcast %cst_37 : f32 to vector<16x128xf32>
    %93 = arith.maximumf %91, %92 : vector<16x128xf32>
    %94 = arith.truncf %93 : vector<16x128xf32> to vector<16x128xbf16>
    %c6 = arith.constant 6 : index
    %c0_38 = arith.constant 0 : index
    %c0_39 = arith.constant 0 : index
    %95 = vector.load %arg2[%c6, %c0_38, %c0_39] : memref<8x128x128xbf16, #tpu.memory_space<vmem>>, vector<1x128x128xbf16>
    %96 = vector.shape_cast %95 : vector<1x128x128xbf16> to vector<128x128xbf16>
    %cst_40 = arith.constant dense<0.000000e+00> : vector<16x128xf32>
    %97 = tpu.matmul %94, %96, %cst_40 {dimension_numbers = #tpu.dot_dimension_numbers<[1], [0], [0], [1], [0, 0, 1, 1], [], []>} : vector<16x128xbf16>, vector<128x128xbf16>, vector<16x128xf32> -> vector<16x128xf32>
    %98 = vector.extract_strided_slice %0 {offsets = [8, 0], sizes = [1, 128], strides = [1, 1]} : vector<16x128xf32> to vector<1x128xf32>
    %99 = vector.broadcast %98 : vector<1x128xf32> to vector<16x128xf32>
    %100 = arith.addf %97, %99 : vector<16x128xf32>
    %101 = vector.extract_strided_slice %0 {offsets = [9, 0], sizes = [1, 128], strides = [1, 1]} : vector<16x128xf32> to vector<1x128xf32>
    %102 = vector.extract_strided_slice %0 {offsets = [10, 0], sizes = [1, 128], strides = [1, 1]} : vector<16x128xf32> to vector<1x128xf32>
    %cst_41 = arith.constant dense<0.000000e+00> : vector<16xf32>
    %103 = vector.multi_reduction <add>, %100, %cst_41 [1] : vector<16x128xf32> to vector<16xf32>
    %104 = vector.shape_cast %103 : vector<16xf32> to vector<16x1xf32>
    %cst_42 = arith.constant 6.250000e-02 : f32
    %105 = vector.broadcast %cst_42 : f32 to vector<16x1xf32>
    %106 = arith.mulf %104, %105 : vector<16x1xf32>
    %107 = vector.broadcast %106 : vector<16x1xf32> to vector<16x128xf32>
    %108 = arith.subf %100, %107 : vector<16x128xf32>
    %109 = arith.mulf %108, %108 : vector<16x128xf32>
    %110 = vector.broadcast %11 : vector<1x128xf32> to vector<16x128xf32>
    %111 = arith.mulf %109, %110 : vector<16x128xf32>
    %cst_43 = arith.constant dense<0.000000e+00> : vector<16xf32>
    %112 = vector.multi_reduction <add>, %111, %cst_43 [1] : vector<16x128xf32> to vector<16xf32>
    %113 = vector.shape_cast %112 : vector<16xf32> to vector<16x1xf32>
    %cst_44 = arith.constant 6.250000e-02 : f32
    %114 = vector.broadcast %cst_44 : f32 to vector<16x1xf32>
    %115 = arith.mulf %113, %114 : vector<16x1xf32>
    %cst_45 = arith.constant 9.99999974E-6 : f32
    %116 = vector.broadcast %cst_45 : f32 to vector<16x1xf32>
    %117 = arith.addf %115, %116 : vector<16x1xf32>
    %118 = math.rsqrt %117 : vector<16x1xf32>
    %119 = vector.broadcast %118 : vector<16x1xf32> to vector<16x128xf32>
    %120 = arith.mulf %108, %119 : vector<16x128xf32>
    %121 = vector.broadcast %101 : vector<1x128xf32> to vector<16x128xf32>
    %122 = arith.mulf %120, %121 : vector<16x128xf32>
    %123 = vector.broadcast %102 : vector<1x128xf32> to vector<16x128xf32>
    %124 = arith.addf %122, %123 : vector<16x128xf32>
    %125 = vector.broadcast %2 : vector<1x1xf32> to vector<16x128xf32>
    %126 = arith.mulf %124, %125 : vector<16x128xf32>
    %127 = tpu.iota {dimensions = array<i32: 0>} : vector<16x1xi32>
    %c2_i32 = arith.constant 2 : i32
    %128 = vector.broadcast %c2_i32 : i32 to vector<16x1xi32>
    %129 = arith.cmpi slt, %127, %128 : vector<16x1xi32>
    %130 = arith.extui %129 : vector<16x1xi1> to vector<16x1xi32>
    %131 = arith.sitofp %130 : vector<16x1xi32> to vector<16x1xf32>
    %c7 = arith.constant 7 : index
    %c0_46 = arith.constant 0 : index
    %c0_47 = arith.constant 0 : index
    %132 = vector.load %arg2[%c7, %c0_46, %c0_47] : memref<8x128x128xbf16, #tpu.memory_space<vmem>>, vector<1x128x128xbf16>
    %133 = vector.shape_cast %132 : vector<1x128x128xbf16> to vector<128x128xbf16>
    %134 = vector.extract_strided_slice %0 {offsets = [11, 0], sizes = [1, 128], strides = [1, 1]} : vector<16x128xf32> to vector<1x128xf32>
    %135 = vector.extract_strided_slice %0 {offsets = [12, 0], sizes = [1, 128], strides = [1, 1]} : vector<16x128xf32> to vector<1x128xf32>
    %136 = vector.extract_strided_slice %0 {offsets = [13, 0], sizes = [1, 128], strides = [1, 1]} : vector<16x128xf32> to vector<1x128xf32>
    %137 = arith.truncf %43 : vector<16x128xf32> to vector<16x128xbf16>
    %cst_48 = arith.constant dense<0.000000e+00> : vector<16x128xf32>
    %138 = tpu.matmul %137, %133, %cst_48 {dimension_numbers = #tpu.dot_dimension_numbers<[1], [0], [0], [1], [0, 0, 1, 1], [], []>} : vector<16x128xbf16>, vector<128x128xbf16>, vector<16x128xf32> -> vector<16x128xf32>
    %139 = vector.broadcast %134 : vector<1x128xf32> to vector<16x128xf32>
    %140 = arith.addf %138, %139 : vector<16x128xf32>
    %141 = vector.broadcast %131 : vector<16x1xf32> to vector<16x128xf32>
    %142 = arith.mulf %140, %141 : vector<16x128xf32>
    %cst_49 = arith.constant dense<0.000000e+00> : vector<128xf32>
    %143 = vector.multi_reduction <add>, %142, %cst_49 [0] : vector<16x128xf32> to vector<128xf32>
    %144 = vector.shape_cast %143 : vector<128xf32> to vector<1x128xf32>
    %cst_50 = arith.constant 5.000000e-01 : f32
    %145 = vector.broadcast %cst_50 : f32 to vector<1x128xf32>
    %146 = arith.mulf %144, %145 : vector<1x128xf32>
    %147 = vector.broadcast %146 : vector<1x128xf32> to vector<16x128xf32>
    %148 = arith.subf %140, %147 : vector<16x128xf32>
    %149 = arith.mulf %148, %148 : vector<16x128xf32>
    %150 = vector.broadcast %131 : vector<16x1xf32> to vector<16x128xf32>
    %151 = arith.mulf %149, %150 : vector<16x128xf32>
    %cst_51 = arith.constant dense<0.000000e+00> : vector<128xf32>
    %152 = vector.multi_reduction <add>, %151, %cst_51 [0] : vector<16x128xf32> to vector<128xf32>
    %153 = vector.shape_cast %152 : vector<128xf32> to vector<1x128xf32>
    %cst_52 = arith.constant 5.000000e-01 : f32
    %154 = vector.broadcast %cst_52 : f32 to vector<1x128xf32>
    %155 = arith.mulf %153, %154 : vector<1x128xf32>
    %cst_53 = arith.constant 9.99999974E-6 : f32
    %156 = vector.broadcast %cst_53 : f32 to vector<1x128xf32>
    %157 = arith.addf %155, %156 : vector<1x128xf32>
    %158 = math.rsqrt %157 : vector<1x128xf32>
    %159 = vector.broadcast %158 : vector<1x128xf32> to vector<16x128xf32>
    %160 = arith.mulf %148, %159 : vector<16x128xf32>
    %161 = vector.broadcast %135 : vector<1x128xf32> to vector<16x128xf32>
    %162 = arith.mulf %160, %161 : vector<16x128xf32>
    %163 = vector.broadcast %136 : vector<1x128xf32> to vector<16x128xf32>
    %164 = arith.addf %162, %163 : vector<16x128xf32>
    %165 = math.tanh %164 : vector<16x128xf32>
    %166 = arith.mulf %165, %165 : vector<16x128xf32>
    %cst_54 = arith.constant dense<0.000000e+00> : vector<16xf32>
    %167 = vector.multi_reduction <add>, %166, %cst_54 [1] : vector<16x128xf32> to vector<16xf32>
    %168 = vector.shape_cast %167 : vector<16xf32> to vector<16x1xf32>
    %169 = math.sqrt %168 : vector<16x1xf32>
    %cst_55 = arith.constant 9.99999996E-13 : f32
    %170 = vector.broadcast %cst_55 : f32 to vector<16x1xf32>
    %171 = arith.maximumf %169, %170 : vector<16x1xf32>
    %172 = vector.broadcast %171 : vector<16x1xf32> to vector<16x128xf32>
    %173 = arith.divf %165, %172 : vector<16x128xf32>
    %c0_56 = arith.constant 0 : index
    %c0_57 = arith.constant 0 : index
    %174 = vector.load %arg4[%c0_56, %c0_57] : memref<64x128xf32, #tpu.memory_space<vmem>>, vector<16x128xf32>
    tpu.vector_store %arg4[%c0_56, %c0_57], %173 {strides = array<i32>} : memref<64x128xf32, #tpu.memory_space<vmem>>, vector<16x128xf32>,
    %175 = arith.truncf %126 : vector<16x128xf32> to vector<16x128xbf16>
    %cst_58 = arith.constant dense<0.000000e+00> : vector<16x128xf32>
    %176 = tpu.matmul %175, %133, %cst_58 {dimension_numbers = #tpu.dot_dimension_numbers<[1], [0], [0], [1], [0, 0, 1, 1], [], []>} : vector<16x128xbf16>, vector<128x128xbf16>, vector<16x128xf32> -> vector<16x128xf32>
    %177 = vector.broadcast %134 : vector<1x128xf32> to vector<16x128xf32>
    %178 = arith.addf %176, %177 : vector<16x128xf32>
    %179 = vector.broadcast %131 : vector<16x1xf32> to vector<16x128xf32>
    %180 = arith.mulf %178, %179 : vector<16x128xf32>
    %cst_59 = arith.constant dense<0.000000e+00> : vector<128xf32>
    %181 = vector.multi_reduction <add>, %180, %cst_59 [0] : vector<16x128xf32> to vector<128xf32>
    %182 = vector.shape_cast %181 : vector<128xf32> to vector<1x128xf32>
    %cst_60 = arith.constant 5.000000e-01 : f32
    %183 = vector.broadcast %cst_60 : f32 to vector<1x128xf32>
    %184 = arith.mulf %182, %183 : vector<1x128xf32>
    %185 = vector.broadcast %184 : vector<1x128xf32> to vector<16x128xf32>
    %186 = arith.subf %178, %185 : vector<16x128xf32>
    %187 = arith.mulf %186, %186 : vector<16x128xf32>
    %188 = vector.broadcast %131 : vector<16x1xf32> to vector<16x128xf32>
    %189 = arith.mulf %187, %188 : vector<16x128xf32>
    %cst_61 = arith.constant dense<0.000000e+00> : vector<128xf32>
    %190 = vector.multi_reduction <add>, %189, %cst_61 [0] : vector<16x128xf32> to vector<128xf32>
    %191 = vector.shape_cast %190 : vector<128xf32> to vector<1x128xf32>
    %cst_62 = arith.constant 5.000000e-01 : f32
    %192 = vector.broadcast %cst_62 : f32 to vector<1x128xf32>
    %193 = arith.mulf %191, %192 : vector<1x128xf32>
    %cst_63 = arith.constant 9.99999974E-6 : f32
    %194 = vector.broadcast %cst_63 : f32 to vector<1x128xf32>
    %195 = arith.addf %193, %194 : vector<1x128xf32>
    %196 = math.rsqrt %195 : vector<1x128xf32>
    %197 = vector.broadcast %196 : vector<1x128xf32> to vector<16x128xf32>
    %198 = arith.mulf %186, %197 : vector<16x128xf32>
    %199 = vector.broadcast %135 : vector<1x128xf32> to vector<16x128xf32>
    %200 = arith.mulf %198, %199 : vector<16x128xf32>
    %201 = vector.broadcast %136 : vector<1x128xf32> to vector<16x128xf32>
    %202 = arith.addf %200, %201 : vector<16x128xf32>
    %203 = math.tanh %202 : vector<16x128xf32>
    %204 = arith.mulf %203, %203 : vector<16x128xf32>
    %cst_64 = arith.constant dense<0.000000e+00> : vector<16xf32>
    %205 = vector.multi_reduction <add>, %204, %cst_64 [1] : vector<16x128xf32> to vector<16xf32>
    %206 = vector.shape_cast %205 : vector<16xf32> to vector<16x1xf32>
    %207 = math.sqrt %206 : vector<16x1xf32>
    %cst_65 = arith.constant 9.99999996E-13 : f32
    %208 = vector.broadcast %cst_65 : f32 to vector<16x1xf32>
    %209 = arith.maximumf %207, %208 : vector<16x1xf32>
    %210 = vector.broadcast %209 : vector<16x1xf32> to vector<16x128xf32>
    %211 = arith.divf %203, %210 : vector<16x128xf32>
    %c16_66 = arith.constant 16 : index
    %c0_67 = arith.constant 0 : index
    %212 = vector.load %arg4[%c16_66, %c0_67] : memref<64x128xf32, #tpu.memory_space<vmem>>, vector<16x128xf32>
    tpu.vector_store %arg4[%c16_66, %c0_67], %211 {strides = array<i32>} : memref<64x128xf32, #tpu.memory_space<vmem>>, vector<16x128xf32>,
    %c32 = arith.constant 32 : index
    %c0_68 = arith.constant 0 : index
    %213 = vector.load %arg4[%c32, %c0_68] : memref<64x128xf32, #tpu.memory_space<vmem>>, vector<16x128xf32>
    tpu.vector_store %arg4[%c32, %c0_68], %43 {strides = array<i32>} : memref<64x128xf32, #tpu.memory_space<vmem>>, vector<16x128xf32>,
    %c48 = arith.constant 48 : index
    %c0_69 = arith.constant 0 : index
    %214 = vector.load %arg4[%c48, %c0_69] : memref<64x128xf32, #tpu.memory_space<vmem>>, vector<16x128xf32>
    tpu.vector_store %arg4[%c48, %c0_69], %126 {strides = array<i32>} : memref<64x128xf32, #tpu.memory_space<vmem>>, vector<16x128xf32>,
    return
  }
}

</mosaic_0001>

<bundles_post_ra>
// kernel: gcn_gan_forward.1
= control target key start
LH: loop header
LB: loop body
LE: loop exit
PB: predicated region body
PF: predicated region fallthrough
CT: control target
= control target key end

     0   :  { %9 = vsyncpa [#allocation3], 0  ;;  %s2653_s15 = smov [#allocation2]   ;;  %s3008_s0 = inlined_call_operand.vmem [shape: bf16[144,128], index: 0, kind: input, shape index: {}]   ;;  %s3009_s1 = inlined_call_operand.vmem [shape: bf16[144,128], index: 1, kind: input, shape index: {}]   ;;  %s3010_s2 = inlined_call_operand.hbm [shape: bf16[8,128,128], index: 2, kind: input, shape index: {}]   ;;  %s3011_s3 = inlined_call_operand.vmem [shape: f32[16,128], index: 3, kind: input, shape index: {}]   ;;  %s3012_s4 = inlined_call_operand.vmem [shape: f32[64,128], index: 4, kind: output, shape index: {}]  }
   0x1   :  { %s19_s16 = sshll.u32 %s2653_s15, 4  ;;  %s2629_s19 = scalar_lea.hbm %s3010_s2, 8192  ;;  %s20_s16 = int_to_ptr.vmem [resolvable:$true] %s19_s16 }
   0x2   :  { %p2630_p0 = scmp.ne.s32.totalorder %s3010_s2, %s2629_s19  ;;  %p2633_p1 = scmp.lt.u32.totalorder %s2629_s19, %s3010_s2 }
   0x4   :  { %p2635_p2 = pnand %p2633_p1, %p2630_p0 }
   0x6   :  { %2638 = shalt.err (!%p2635_p2)
}
   0x7   :  { %s2639_s24 = scalar_lea.vmem %s20_s16, 8192  ;;  %p2644_p4 = scmp.lt.s32.totalorder %s20_s16, %s20_s16 }
   0x8   :  { %p2640_p3 = scmp.ne.s32.totalorder %s20_s16, %s2639_s24  ;;  %p2645_p5 = scmp.lt.s32.totalorder %s2639_s24, %s2639_s24 }
   0xa   :  { %p2646_p6 = por %p2645_p5, %p2644_p4 }
   0xc   :  { %p2647_p7 = pnand %p2646_p6, %p2640_p3 }
   0xe   :  { %2650 = shalt.err (!%p2647_p7)
}
   0xf   :  { %s2654_s25 = smov 64   ;;  %s2655_s26 = smov 4  }
  0x10   :  { %25 = dma.hbm_to_vmem [thread:$0]  %s3010_s2, 8192, %s20_s16, [#allocation3], %s2654_s25, %s2654_s25, %s2655_s26  }
  0x11   :  { %2651 = dma.done.wait [#allocation3], 8192  }
  0x12   :  { %2652 = vsyncadd [#allocation3], 4294959104  ;;  %v2656_v0 = vmov 0.0   ;;  %vm2657_vm0 = vmmov 0   ;;  %v2507_v1 = vld [vmem:[#allocation2] sm:$0xff]   ;;  %v2509_v3 = vld [vmem:[#allocation2 + $0x8] sm:$0xff]   ;;  %v72_v27 = vlaneseq }
  0x13   :  { %2168 = vmatprep.subr.bf16.mxu0 %v2656_v0  ;;  %2184 = vmatprep.mubr.msk.bf16.mxu0 %vm2657_vm0, %v2656_v0  ;;  %v2508_v2 = vld [vmem:[#allocation2 + $0x40] sm:$0xff]   ;;  %v2510_v4 = vld [vmem:[#allocation2 + $0x48] sm:$0xff]   ;;  %v2512_v5 = vld [vmem:[#allocation2 + $0x50] sm:$0xff]  }
  0x14   :  { %2169 = vmatpush3.bf16.msra.mxu0 %v2507_v1  ;;  %2188 = vmatprep.subr.bf16.mxu1 %v2508_v2  ;;  %v2511_v6 = vld [vmem:[#allocation2 + $0x10] sm:$0xff]   ;;  %v2514_v7 = vld [vmem:[#allocation2 + $0x58] sm:$0xff]   ;;  %v2516_v9 = vld [vmem:[#allocation2 + $0x60] sm:$0xff]   ;;  %v2739_v28 = vshrl.u32 %v72_v27, 7 }
  0x15   :  { %2170 = vmatprep.subr.bf16.mxu0 %v2656_v0  ;;  %2189 = vmatpush3.bf16.msra.mxu1 %v2508_v2  ;;  %v2513_v8 = vld [vmem:[#allocation2 + $0x18] sm:$0xff]   ;;  %v2515_v10 = vld [vmem:[#allocation2 + $0x20] sm:$0xff]   ;;  %v2518_v11 = vld [vmem:[#allocation2 + $0x68] sm:$0xff]  }
  0x16   :  { %2190 = vmatprep.subr.bf16.mxu1 %v2510_v4  ;;  %v2524_v12 = vld [vmem:[%s3008_s0 + $0x8] sm:$0xff]   ;;  %v2520_v14 = vld [vmem:[#allocation2 + $0x70] sm:$0xff]   ;;  %v2521_v16 = vld [vmem:[#allocation2 + $0x38] sm:$0xff]   ;;  %v95_v29 = vsub.s32 0, %v2739_v28  ;;  %vm1625_vm2 = vcmp.lt.s32.totalorder %v2739_v28, 2 }
  0x17   :  { %v2517_v13 = vld [vmem:[#allocation2 + $0x28] sm:$0xff]   ;;  %2204 = vmatprep.mubr.bf16.mxu1 %v2524_v12  ;;  %v2519_v15 = vld [vmem:[#allocation2 + $0x30] sm:$0xff]   ;;  %v2522_v17 = vld [vmem:[#allocation2 + $0x78] sm:$0xff]  }
  0x18   :  { %2171 = vmatpush3.bf16.msra.mxu0 %v2509_v3  ;;  %v2523_v18 = vld [vmem:[%s3008_s0] sm:$0xff]   ;;  %v2525_v19 = vld [vmem:[%s3008_s0 + $0x10] sm:$0xff]   ;;  %v2526_v20 = vld [vmem:[%s3008_s0 + $0x18] sm:$0xff]  }
  0x19   :  { %2172 = vmatprep.subr.bf16.mxu0 %v2656_v0  ;;  %2191 = vmatpush3.bf16.msra.mxu1 %v2510_v4  ;;  %v2527_v21 = vld [vmem:[%s3008_s0 + $0x20] sm:$0xff]   ;;  %v2528_v22 = vld [vmem:[%s3008_s0 + $0x28] sm:$0xff]   ;;  %v2529_v23 = vld [vmem:[%s3008_s0 + $0x30] sm:$0xff]  }
  0x1a   :  { %2192 = vmatprep.subr.bf16.mxu1 %v2512_v5  ;;  %v2530_v24 = vld [vmem:[%s3008_s0 + $0x38] sm:$0xff]   ;;  %v2531_v25 = vld [vmem:[%s3008_s0 + $0x40] sm:$0xff]   ;;  %v2541_v57 = vld [vmem:[#allocation2 + $0x88] sm:$0xff]  }
  0x1b   :  { %v2735_v26 = vld [vmem:[%s3009_s1] sm:$0xff]   ;;  %v2542_v63 = vld [vmem:[#allocation2 + $0x90] sm:$0xff]   ;;  %v2543_v2 = vld [vmem:[#allocation2 + $0x98] sm:$0xff]  }
  0x1c   :  { %2173 = vmatpush3.bf16.msra.mxu0 %v2511_v6  ;;  %v2745_v30 = vld [vmem:[%s3011_s3] sm:$0xff]  ;;  %v2759_v3 = vld [vmem:[%s3009_s1 + $0x8] sm:$0xff]   ;;  %v2764_v4 = vld [vmem:[%s3009_s1 + $0x10] sm:$0xff]  }
  0x1d   :  { %2174 = vmatprep.subr.bf16.mxu0 %v2656_v0  ;;  %2193 = vmatpush3.bf16.msra.mxu1 %v2512_v5  ;;  %v96_v31 = vrot.slane %v2745_v30, %v95_v29  ;;  %v2540_v56 = vld [vmem:[#allocation2 + $0x80] sm:$0xff]   ;;  %v2545_v6 = vld [vmem:[#allocation2 + $0xa8] sm:$0xff]  }
  0x1e   :  { %2194 = vmatprep.subr.bf16.mxu1 %v2514_v7  ;;  %v2544_v5 = vld [vmem:[#allocation2 + $0xa0] sm:$0xff]   ;;  %v2802_v12 = vld [vmem:[%s3011_s3 + $0x8] sm:$0xff] }
  0x20   :  { %2175 = vmatpush3.bf16.msra.mxu0 %v2513_v8  ;;  %v2776_v8 = vld [vmem:[%s3009_s1 + $0x20] sm:$0xff]  }
  0x21   :  { %2176 = vmatprep.subr.bf16.mxu0 %v2656_v0  ;;  %2195 = vmatpush3.bf16.msra.mxu1 %v2514_v7  ;;  %v2771_v7 = vld [vmem:[%s3009_s1 + $0x18] sm:$0xff]  }
  0x22   :  { %2196 = vmatprep.subr.bf16.mxu1 %v2516_v9 }
  0x24   :  { %2177 = vmatpush3.bf16.msra.mxu0 %v2515_v10  ;;  %v2788_v10 = vld [vmem:[%s3009_s1 + $0x30] sm:$0xff]  }
  0x25   :  { %2178 = vmatprep.subr.bf16.mxu0 %v2656_v0  ;;  %2197 = vmatpush3.bf16.msra.mxu1 %v2516_v9  ;;  %v2783_v9 = vld [vmem:[%s3009_s1 + $0x28] sm:$0xff]  }
  0x26   :  { %2198 = vmatprep.subr.bf16.mxu1 %v2518_v11 }
  0x28   :  { %2179 = vmatpush3.bf16.msra.mxu0 %v2517_v13  ;;  %v34_v13 = vmul.f32 1.442695, %v2802_v12 }
  0x29   :  { %2180 = vmatprep.subr.bf16.mxu0 %v2656_v0  ;;  %2199 = vmatpush3.bf16.msra.mxu1 %v2518_v11  ;;  %v2795_v11 = vld [vmem:[%s3009_s1 + $0x38] sm:$0xff]  }
  0x2a   :  { %2200 = vmatprep.subr.bf16.mxu1 %v2520_v14  ;;  %2589 = vpow2.f32 %v34_v13 }
  0x2c   :  { %2181 = vmatpush3.bf16.msra.mxu0 %v2519_v15  ;;  %v2547_v15 = vld [vmem:[#allocation2 + $0xb8] sm:$0xff]  }
  0x2d   :  { %2182 = vmatprep.subr.bf16.mxu0 %v2656_v0  ;;  %2201 = vmatpush3.bf16.msra.mxu1 %v2520_v14  ;;  %v2546_v14 = vld [vmem:[#allocation2 + $0xb0] sm:$0xff]  }
  0x2e   :  { %2202 = vmatprep.subr.bf16.mxu1 %v2522_v17 }
  0x30   :  { %2183 = vmatpush3.bf16.msra.mxu0 %v2521_v16 }
  0x31   :  { %2203 = vmatpush3.bf16.msra.mxu1 %v2522_v17 }
  0x32   :  { %2252 = vmatprep.subr.bf16.mxu1 %v2540_v56 }
  0x33   :  { %2185 = vmatmul.mubr.bf16.vlgmr.msra.gmra.mrb[0].mxu0 %v2523_v18  ;;  %v73_v18 = vand.u32 127, %v72_v27 }
  0x34   :  { %2205 = vmatmul.mubr.bf16.vlgmr.msra.gmra.mrb[0].mxu1 %v2525_v19  ;;  %2236 = vmatprep.mubr.bf16.mxu0 %v2735_v26  ;;  %v2590_v16 = vpop.eup %2589 }
  0x35   :  { %2208 = vmatprep.mubr.bf16.mxu1 %v2526_v20  ;;  %2253 = vmatpush3.bf16.msra.mxu1 %v2540_v56  ;;  %v229_v17 = vrot.slane %v2590_v16, 6  ;;  %vm74_vm1 = vcmp.lt.s32.totalorder %v73_v18, 16 }
  0x36   :  { %2254 = vmatprep.subr.bf16.mxu1 %v2541_v57 }
  0x37   :  { %2500 = vpush %v229_v17 }
  0x39   :  { %2255 = vmatpush3.bf16.msra.mxu1 %v2541_v57 }
  0x3a   :  { %2256 = vmatprep.subr.bf16.mxu1 %v2542_v63 }
  0x3c   :  { %2209 = vmatmul.mubr.bf16.gmra.mrb[4].mxu1 %v2527_v21 }
  0x3d   :  { %2212 = vmatprep.mubr.bf16.mxu1 %v2528_v22  ;;  %2257 = vmatpush3.bf16.msra.mxu1 %v2542_v63  ;;  %v2810_v22 = vsel %vm74_vm1, 1.0, %v2656_v0 }
  0x3e   :  { %2258 = vmatprep.subr.bf16.mxu1 %v2543_v2 }
  0x41   :  { %2259 = vmatpush3.bf16.msra.mxu1 %v2543_v2 }
  0x42   :  { %2260 = vmatprep.subr.bf16.mxu1 %v2544_v5 }
  0x44   :  { %2213 = vmatmul.mubr.bf16.gmra.mrb[8].mxu1 %v2529_v23 }
  0x45   :  { %2216 = vmatprep.mubr.bf16.mxu1 %v2530_v24  ;;  %2261 = vmatpush3.bf16.msra.mxu1 %v2544_v5 }
  0x46   :  { %2262 = vmatprep.subr.bf16.mxu1 %v2545_v6 }
  0x49   :  { %2263 = vmatpush3.bf16.msra.mxu1 %v2545_v6 }
  0x4a   :  { %2264 = vmatprep.subr.bf16.mxu1 %v2546_v14 }
  0x4c   :  { %2217 = vmatmul.mubr.bf16.gmra.mrb[12].mxu1 %v2531_v25  ;;  %v455_v25 = vsub.s32 3, %v2739_v28 }
  0x4d   :  { %2265 = vmatpush3.bf16.msra.mxu1 %v2546_v14 }
  0x4e   :  { %2266 = vmatprep.subr.bf16.mxu1 %v2547_v15  ;;  %v456_v27 = vrot.slane %v2745_v30, %v455_v25 }
  0x51   :  { %2267 = vmatpush3.bf16.msra.mxu1 %v2547_v15 }
  0x68   :  { %s2501_s12 = spop %2500 }
 0x106   :  { %v185_v32 = vpop.f32.mrb[0].mxu0 }
 0x107   :  { %v2750_v33 = vadd.f32 %v185_v32, %v96_v31  ;;  %v2186_v34 = vpop.f32.mrb[1].mxu0  ;;  %v2206_v35 = vpop.f32.mrb[0].mxu1 }
 0x108   :  { %v188_v36 = vpop.f32.mrb[2].mxu0  ;;  %v382_v37 = vpop.f32.mrb[1].mxu1 }
 0x109   :  { %192 = vadd.xlane.f32.xlu0 %v2750_v33  ;;  %v2753_v38 = vadd.f32 %v188_v36, %v96_v31  ;;  %v2187_v39 = vpop.f32.mrb[3].mxu0  ;;  %v2207_v40 = vpop.f32.mrb[2].mxu1 }
 0x10a   :  { %v446_v41 = vpack.c.bf16 %v2207_v40, %v2206_v35  ;;  %v385_v42 = vpop.f32.mrb[3].mxu1 }
 0x10b   :  { %v445_v43 = vpack.c.bf16 %v385_v42, %v382_v37 }
 0x10d   :  { %194 = vadd.xlane.f32.xlu0 %v2753_v38  ;;  %2220 = vmatprep.subr.bf16.mxu0 %v445_v43 }
 0x10e   :  { %2221 = vmatpush3.bf16.msra.mxu0 %v445_v43 }
 0x10f   :  { %v2210_v44 = vpop.f32.mrb[4].mxu1  ;;  %2222 = vmatprep.subr.bf16.mxu0 %v446_v41 }
 0x110   :  { %v398_v45 = vpop.f32.mrb[5].mxu1 }
 0x111   :  { %v2211_v46 = vpop.f32.mrb[6].mxu1 }
 0x112   :  { %v448_v47 = vpack.c.bf16 %v2211_v46, %v2210_v44  ;;  %v401_v48 = vpop.f32.mrb[7].mxu1  ;;  %2223 = vmatpush3.bf16.msra.mxu0 %v446_v41 }
 0x113   :  { %v447_v49 = vpack.c.bf16 %v401_v48, %v398_v45 }
 0x115   :  { %2224 = vmatprep.subr.bf16.mxu0 %v447_v49 }
 0x116   :  { %2225 = vmatpush3.bf16.msra.mxu0 %v447_v49 }
 0x117   :  { %v2214_v50 = vpop.f32.mrb[8].mxu1  ;;  %2226 = vmatprep.subr.bf16.mxu0 %v448_v47 }
 0x118   :  { %v414_v51 = vpop.f32.mrb[9].mxu1 }
 0x119   :  { %v2215_v52 = vpop.f32.mrb[10].mxu1 }
 0x11a   :  { %v450_v53 = vpack.c.bf16 %v2215_v52, %v2214_v50  ;;  %v417_v54 = vpop.f32.mrb[11].mxu1  ;;  %2227 = vmatpush3.bf16.msra.mxu0 %v448_v47 }
 0x11b   :  { %v449_v55 = vpack.c.bf16 %v417_v54, %v414_v51 }
 0x11d   :  { %2228 = vmatprep.subr.bf16.mxu0 %v449_v55 }
 0x11e   :  { %2229 = vmatpush3.bf16.msra.mxu0 %v449_v55 }
 0x11f   :  { %v2218_v58 = vpop.f32.mrb[12].mxu1  ;;  %2230 = vmatprep.subr.bf16.mxu0 %v450_v53 }
 0x120   :  { %v430_v59 = vpop.f32.mrb[13].mxu1 }
 0x121   :  { %v2219_v60 = vpop.f32.mrb[14].mxu1 }
 0x122   :  { %v452_v61 = vpack.c.bf16 %v2219_v60, %v2218_v58  ;;  %v433_v62 = vpop.f32.mrb[15].mxu1  ;;  %2231 = vmatpush3.bf16.msra.mxu0 %v450_v53 }
 0x123   :  { %v451_v1 = vpack.c.bf16 %v433_v62, %v430_v59 }
 0x125   :  { %2232 = vmatprep.subr.bf16.mxu0 %v451_v1 }
 0x126   :  { %2233 = vmatpush3.bf16.msra.mxu0 %v451_v1 }
 0x127   :  { %2234 = vmatprep.subr.bf16.mxu0 %v452_v61 }
 0x12a   :  { %2235 = vmatpush3.bf16.msra.mxu0 %v452_v61 }
 0x12d   :  { %2237 = vmatmul.mubr.bf16.vlgmr.msra.gmra.mrb[4].mxu0 %v2759_v3 }
 0x12e   :  { %2240 = vmatprep.mubr.bf16.mxu0 %v2764_v4 }
 0x135   :  { %2241 = vmatmul.mubr.bf16.gmra.mrb[8].mxu0 %v2771_v7 }
 0x136   :  { %2244 = vmatprep.mubr.bf16.mxu0 %v2776_v8 }
 0x13d   :  { %2245 = vmatmul.mubr.bf16.gmra.mrb[12].mxu0 %v2783_v9 }
 0x13e   :  { %2248 = vmatprep.mubr.bf16.mxu0 %v2788_v10 }
 0x145   :  { %2249 = vmatmul.mubr.bf16.gmra.mrb[16].mxu0 %v2795_v11 }
 0x146   :  { %2300 = vmatprep.mubr.bf16.mxu0 %v2735_v26 }
 0x196   :  { %v193_v19 = vpop.xlane.xlu0 %192 }
 0x197   :  { %v196_v20 = vmul.f32 0.0625, %v193_v19 }
 0x199   :  { %v2807_v21 = vsub.f32 %v2750_v33, %v196_v20 }
 0x19b   :  { %v200_v23 = vmul.f32 %v2807_v21, %v2807_v21 }
 0x19d   :  { %v202_v24 = vmul.f32 %v2810_v22, %v200_v23 }
 0x19f   :  { %204 = vadd.xlane.f32.xlu0 %v202_v24 }
 0x200   :  { %v2238_v31 = vpop.f32.mrb[4].mxu0 }
 0x201   :  { %v548_v32 = vadd.f32 %v2238_v31, %v456_v27  ;;  %v539_v34 = vpop.f32.mrb[5].mxu0 }
 0x202   :  { %v540_v33 = vadd.f32 %v539_v34, %v456_v27  ;;  %v2239_v35 = vpop.f32.mrb[6].mxu0 }
 0x203   :  { %v551_v36 = vadd.f32 %v2239_v35, %v456_v27  ;;  %v542_v37 = vpop.f32.mrb[7].mxu0  ;;  %v604_v40 = vmax.f32 %v548_v32, 0.0 }
 0x204   :  { %v543_v39 = vadd.f32 %v542_v37, %v456_v27  ;;  %v602_v42 = vmax.f32 %v540_v33, 0.0 }
 0x205   :  { %v605_v41 = vmax.f32 %v551_v36, 0.0 }
 0x206   :  { %v603_v43 = vmax.f32 %v543_v39, 0.0 }
 0x207   :  { %v619_v44 = vpack.c.bf16 %v605_v41, %v604_v40 }
 0x208   :  { %v618_v45 = vpack.c.bf16 %v603_v43, %v602_v42  ;;  %v2242_v46 = vpop.f32.mrb[8].mxu0  ;;  %v2819_v42 = vpop.xlane.xlu0 %194 }
 0x209   :  { %v564_v47 = vadd.f32 %v2242_v46, %v456_v27  ;;  %v555_v48 = vpop.f32.mrb[9].mxu0  ;;  %v218_v46 = vsub.s32 1, %v2739_v28 }
 0x20a   :  { %v556_v49 = vadd.f32 %v555_v48, %v456_v27  ;;  %v2243_v50 = vpop.f32.mrb[10].mxu0  ;;  %2268 = vmatprep.mubr.bf16.mxu1 %v618_v45 }
 0x20b   :  { %v567_v51 = vadd.f32 %v2243_v50, %v456_v27  ;;  %v558_v52 = vpop.f32.mrb[11].mxu0  ;;  %2269 = vmatmul.mubr.bf16.vlgmr.msra.gmra.mrb[16].mxu1 %v619_v44  ;;  %v608_v54 = vmax.f32 %v564_v47, 0.0  ;;  %v224_v47 = vsub.s32 2, %v2739_v28 }
 0x20c   :  { %v559_v53 = vadd.f32 %v558_v52, %v456_v27  ;;  %v606_v56 = vmax.f32 %v556_v49, 0.0  ;;  %v2835_v52 = vstv %s2501_s12 }
 0x20d   :  { %v609_v55 = vmax.f32 %v567_v51, 0.0  ;;  %v2832_v50 = vrot.slane %v2745_v30, %v224_v47 }
 0x20e   :  { %v607_v57 = vmax.f32 %v559_v53, 0.0 }
 0x20f   :  { %v621_v58 = vpack.c.bf16 %v609_v55, %v608_v54  ;;  %v2549_v55 = vld [vmem:[#allocation2 + $0xc8] sm:$0xff]  }
 0x210   :  { %v620_v59 = vpack.c.bf16 %v607_v57, %v606_v56  ;;  %v2246_v60 = vpop.f32.mrb[12].mxu0  ;;  %v2550_v56 = vld [vmem:[#allocation2 + $0xd0] sm:$0xff]   ;;  %v2551_v57 = vld [vmem:[#allocation2 + $0xd8] sm:$0xff]  }
 0x211   :  { %v580_v61 = vadd.f32 %v2246_v60, %v456_v27  ;;  %v571_v62 = vpop.f32.mrb[13].mxu0 }
 0x212   :  { %v572_v63 = vadd.f32 %v571_v62, %v456_v27  ;;  %v2247_v1 = vpop.f32.mrb[14].mxu0  ;;  %2272 = vmatprep.mubr.bf16.mxu1 %v620_v59  ;;  %v2553_v59 = vld [vmem:[#allocation2 + $0xe8] sm:$0xff]  }
 0x213   :  { %v583_v2 = vadd.f32 %v2247_v1, %v456_v27  ;;  %v574_v5 = vpop.f32.mrb[15].mxu0  ;;  %2273 = vmatmul.mubr.bf16.gmra.mrb[20].mxu1 %v621_v58  ;;  %v612_v13 = vmax.f32 %v580_v61, 0.0  ;;  %v2552_v58 = vld [vmem:[#allocation2 + $0xe0] sm:$0xff]  }
 0x214   :  { %v575_v6 = vadd.f32 %v574_v5, %v456_v27  ;;  %v610_v15 = vmax.f32 %v572_v63, 0.0 }
 0x215   :  { %v613_v14 = vmax.f32 %v583_v2, 0.0 }
 0x216   :  { %v611_v16 = vmax.f32 %v575_v6, 0.0 }
 0x217   :  { %v623_v17 = vpack.c.bf16 %v613_v14, %v612_v13 }
 0x218   :  { %v622_v18 = vpack.c.bf16 %v611_v16, %v610_v15  ;;  %v2250_v19 = vpop.f32.mrb[16].mxu0 }
 0x219   :  { %v596_v20 = vadd.f32 %v2250_v19, %v456_v27  ;;  %v587_v23 = vpop.f32.mrb[17].mxu0 }
 0x21a   :  { %v588_v24 = vadd.f32 %v587_v23, %v456_v27  ;;  %v2251_v31 = vpop.f32.mrb[18].mxu0  ;;  %2276 = vmatprep.mubr.bf16.mxu1 %v622_v18 }
 0x21b   :  { %v599_v32 = vadd.f32 %v2251_v31, %v456_v27  ;;  %v590_v34 = vpop.f32.mrb[19].mxu0  ;;  %2277 = vmatmul.mubr.bf16.gmra.mrb[24].mxu1 %v623_v17  ;;  %v616_v35 = vmax.f32 %v596_v20, 0.0 }
 0x21c   :  { %v591_v33 = vadd.f32 %v590_v34, %v456_v27  ;;  %v614_v37 = vmax.f32 %v588_v24, 0.0  ;;  %v2826_v27 = vrot.slane %v2745_v30, %v218_v46 }
 0x21d   :  { %v617_v36 = vmax.f32 %v599_v32, 0.0 }
 0x21e   :  { %v615_v39 = vmax.f32 %v591_v33, 0.0 }
 0x21f   :  { %v625_v40 = vpack.c.bf16 %v617_v36, %v616_v35 }
 0x220   :  { %v624_v41 = vpack.c.bf16 %v615_v39, %v614_v37  ;;  %v2554_v37 = vld [vmem:[#allocation2 + $0xf0] sm:$0xff]   ;;  %v2555_v39 = vld [vmem:[#allocation2 + $0xf8] sm:$0xff]  }
 0x222   :  { %2280 = vmatprep.mubr.bf16.mxu1 %v624_v41 }
 0x223   :  { %2281 = vmatmul.mubr.bf16.gmra.mrb[28].mxu1 %v625_v40  ;;  %v798_v40 = vsub.s32 4, %v2739_v28 }
 0x225   :  { %v799_v41 = vrot.slane %v2745_v30, %v798_v40 }
 0x22c   :  { %v205_v43 = vpop.xlane.xlu0 %204 }
 0x22d   :  { %v208_v44 = vmul.f32 0.0625, %v205_v43 }
 0x22f   :  { %v210_v45 = vadd.f32 1e-05, %v208_v44 }
 0x231   :  { %2591 = vrsqrt.f32 %v210_v45 }
 0x23b   :  { %v2592_v48 = vpop.eup %2591 }
 0x23c   :  { %v214_v49 = vmul.f32 %v2592_v48, %v2807_v21  ;;  %v2548_v21 = vld [vmem:[#allocation2 + $0xc0] sm:$0xff]  }
 0x23d   :  { %2316 = vmatprep.subr.bf16.mxu1 %v2548_v21 }
 0x23e   :  { %v220_v51 = vmul.f32 %v2826_v27, %v214_v49  ;;  %2317 = vmatpush3.bf16.msra.mxu1 %v2548_v21 }
 0x23f   :  { %2318 = vmatprep.subr.bf16.mxu1 %v2549_v55 }
 0x240   :  { %v226_v53 = vadd.f32 %v2832_v50, %v220_v51 }
 0x242   :  { %v2839_v54 = vmul.f32 %v2835_v52, %v226_v53  ;;  %2319 = vmatpush3.bf16.msra.mxu1 %v2549_v55 }
 0x243   :  { %2320 = vmatprep.subr.bf16.mxu1 %v2550_v56 }
 0x244   :  { %1916 = vst [vmem:[%s3012_s4 + $0x20] sm:$0xff] %v2839_v54 }
 0x246   :  { %2321 = vmatpush3.bf16.msra.mxu1 %v2550_v56 }
 0x247   :  { %2322 = vmatprep.subr.bf16.mxu1 %v2551_v57 }
 0x24a   :  { %2323 = vmatpush3.bf16.msra.mxu1 %v2551_v57 }
 0x24b   :  { %2324 = vmatprep.subr.bf16.mxu1 %v2552_v58 }
 0x24e   :  { %2325 = vmatpush3.bf16.msra.mxu1 %v2552_v58 }
 0x24f   :  { %2326 = vmatprep.subr.bf16.mxu1 %v2553_v59 }
 0x252   :  { %2327 = vmatpush3.bf16.msra.mxu1 %v2553_v59 }
 0x253   :  { %2328 = vmatprep.subr.bf16.mxu1 %v2554_v37 }
 0x256   :  { %2329 = vmatpush3.bf16.msra.mxu1 %v2554_v37 }
 0x257   :  { %2330 = vmatprep.subr.bf16.mxu1 %v2555_v39 }
 0x25a   :  { %2331 = vmatpush3.bf16.msra.mxu1 %v2555_v39 }
 0x25b   :  { %2380 = vmatprep.subr.bf16.mxu1 %v2656_v0 }
 0x2de   :  { %v2270_v60 = vpop.f32.mrb[16].mxu1 }
 0x2df   :  { %v725_v61 = vpop.f32.mrb[17].mxu1 }
 0x2e0   :  { %v2271_v62 = vpop.f32.mrb[18].mxu1 }
 0x2e1   :  { %v789_v63 = vpack.c.bf16 %v2271_v62, %v2270_v60  ;;  %v728_v1 = vpop.f32.mrb[19].mxu1 }
 0x2e2   :  { %v788_v2 = vpack.c.bf16 %v728_v1, %v725_v61 }
 0x2e4   :  { %2284 = vmatprep.subr.bf16.mxu0 %v788_v2 }
 0x2e5   :  { %2285 = vmatpush3.bf16.msra.mxu0 %v788_v2 }
 0x2e6   :  { %v2274_v5 = vpop.f32.mrb[20].mxu1  ;;  %2286 = vmatprep.subr.bf16.mxu0 %v789_v63 }
 0x2e7   :  { %v741_v6 = vpop.f32.mrb[21].mxu1 }
 0x2e8   :  { %v2275_v13 = vpop.f32.mrb[22].mxu1 }
 0x2e9   :  { %v791_v14 = vpack.c.bf16 %v2275_v13, %v2274_v5  ;;  %v744_v15 = vpop.f32.mrb[23].mxu1  ;;  %2287 = vmatpush3.bf16.msra.mxu0 %v789_v63 }
 0x2ea   :  { %v790_v16 = vpack.c.bf16 %v744_v15, %v741_v6 }
 0x2ec   :  { %2288 = vmatprep.subr.bf16.mxu0 %v790_v16 }
 0x2ed   :  { %2289 = vmatpush3.bf16.msra.mxu0 %v790_v16 }
 0x2ee   :  { %v2278_v17 = vpop.f32.mrb[24].mxu1  ;;  %2290 = vmatprep.subr.bf16.mxu0 %v791_v14 }
 0x2ef   :  { %v757_v18 = vpop.f32.mrb[25].mxu1 }
 0x2f0   :  { %v2279_v19 = vpop.f32.mrb[26].mxu1 }
 0x2f1   :  { %v793_v20 = vpack.c.bf16 %v2279_v19, %v2278_v17  ;;  %v760_v23 = vpop.f32.mrb[27].mxu1  ;;  %2291 = vmatpush3.bf16.msra.mxu0 %v791_v14 }
 0x2f2   :  { %v792_v24 = vpack.c.bf16 %v760_v23, %v757_v18 }
 0x2f4   :  { %2292 = vmatprep.subr.bf16.mxu0 %v792_v24 }
 0x2f5   :  { %2293 = vmatpush3.bf16.msra.mxu0 %v792_v24 }
 0x2f6   :  { %v2282_v31 = vpop.f32.mrb[28].mxu1  ;;  %2294 = vmatprep.subr.bf16.mxu0 %v793_v20 }
 0x2f7   :  { %v773_v32 = vpop.f32.mrb[29].mxu1 }
 0x2f8   :  { %v2283_v34 = vpop.f32.mrb[30].mxu1 }
 0x2f9   :  { %v795_v33 = vpack.c.bf16 %v2283_v34, %v2282_v31  ;;  %v776_v35 = vpop.f32.mrb[31].mxu1  ;;  %2295 = vmatpush3.bf16.msra.mxu0 %v793_v20 }
 0x2fa   :  { %v794_v36 = vpack.c.bf16 %v776_v35, %v773_v32 }
 0x2fc   :  { %2296 = vmatprep.subr.bf16.mxu0 %v794_v36 }
 0x2fd   :  { %2297 = vmatpush3.bf16.msra.mxu0 %v794_v36 }
 0x2fe   :  { %2298 = vmatprep.subr.bf16.mxu0 %v795_v33 }
 0x301   :  { %2299 = vmatpush3.bf16.msra.mxu0 %v795_v33 }
 0x304   :  { %2301 = vmatmul.mubr.bf16.vlgmr.msra.gmra.mrb[20].mxu0 %v2759_v3 }
 0x305   :  { %2304 = vmatprep.mubr.bf16.mxu0 %v2764_v4 }
 0x30c   :  { %2305 = vmatmul.mubr.bf16.gmra.mrb[24].mxu0 %v2771_v7 }
 0x30d   :  { %2308 = vmatprep.mubr.bf16.mxu0 %v2776_v8 }
 0x314   :  { %2309 = vmatmul.mubr.bf16.gmra.mrb[28].mxu0 %v2783_v9 }
 0x315   :  { %2312 = vmatprep.mubr.bf16.mxu0 %v2788_v10 }
 0x31c   :  { %2313 = vmatmul.mubr.bf16.gmra.mrb[32].mxu0 %v2795_v11 }
 0x31d   :  { %2364 = vmatprep.mubr.bf16.mxu0 %v2735_v26 }
 0x3d7   :  { %v2302_v43 = vpop.f32.mrb[20].mxu0 }
 0x3d8   :  { %v843_v44 = vadd.f32 %v2302_v43, %v799_v41  ;;  %v834_v45 = vpop.f32.mrb[21].mxu0 }
 0x3d9   :  { %v835_v48 = vadd.f32 %v834_v45, %v799_v41  ;;  %v2303_v49 = vpop.f32.mrb[22].mxu0 }
 0x3da   :  { %v846_v26 = vadd.f32 %v2303_v49, %v799_v41  ;;  %v837_v51 = vpop.f32.mrb[23].mxu0  ;;  %v899_v21 = vmax.f32 %v843_v44, 0.0 }
 0x3db   :  { %v838_v53 = vadd.f32 %v837_v51, %v799_v41  ;;  %v897_v56 = vmax.f32 %v835_v48, 0.0 }
 0x3dc   :  { %v900_v55 = vmax.f32 %v846_v26, 0.0 }
 0x3dd   :  { %v898_v57 = vmax.f32 %v838_v53, 0.0 }
 0x3de   :  { %v914_v58 = vpack.c.bf16 %v900_v55, %v899_v21 }
 0x3df   :  { %v913_v59 = vpack.c.bf16 %v898_v57, %v897_v56  ;;  %v2306_v60 = vpop.f32.mrb[24].mxu0 }
 0x3e0   :  { %v859_v61 = vadd.f32 %v2306_v60, %v799_v41  ;;  %v850_v62 = vpop.f32.mrb[25].mxu0 }
 0x3e1   :  { %v851_v63 = vadd.f32 %v850_v62, %v799_v41  ;;  %v2307_v1 = vpop.f32.mrb[26].mxu0  ;;  %2332 = vmatprep.mubr.bf16.mxu1 %v913_v59 }
 0x3e2   :  { %v862_v2 = vadd.f32 %v2307_v1, %v799_v41  ;;  %v853_v5 = vpop.f32.mrb[27].mxu0  ;;  %2333 = vmatmul.mubr.bf16.vlgmr.msra.gmra.mrb[32].mxu1 %v914_v58  ;;  %v903_v13 = vmax.f32 %v859_v61, 0.0 }
 0x3e3   :  { %v854_v6 = vadd.f32 %v853_v5, %v799_v41  ;;  %v901_v15 = vmax.f32 %v851_v63, 0.0 }
 0x3e4   :  { %v904_v14 = vmax.f32 %v862_v2, 0.0 }
 0x3e5   :  { %v902_v16 = vmax.f32 %v854_v6, 0.0 }
 0x3e6   :  { %v916_v17 = vpack.c.bf16 %v904_v14, %v903_v13 }
 0x3e7   :  { %v915_v18 = vpack.c.bf16 %v902_v16, %v901_v15  ;;  %v2310_v19 = vpop.f32.mrb[28].mxu0 }
 0x3e8   :  { %v875_v20 = vadd.f32 %v2310_v19, %v799_v41  ;;  %v866_v23 = vpop.f32.mrb[29].mxu0 }
 0x3e9   :  { %v867_v24 = vadd.f32 %v866_v23, %v799_v41  ;;  %v2311_v31 = vpop.f32.mrb[30].mxu0  ;;  %2336 = vmatprep.mubr.bf16.mxu1 %v915_v18 }
 0x3ea   :  { %v878_v32 = vadd.f32 %v2311_v31, %v799_v41  ;;  %v869_v34 = vpop.f32.mrb[31].mxu0  ;;  %2337 = vmatmul.mubr.bf16.gmra.mrb[36].mxu1 %v916_v17  ;;  %v907_v35 = vmax.f32 %v875_v20, 0.0 }
 0x3eb   :  { %v870_v33 = vadd.f32 %v869_v34, %v799_v41  ;;  %v905_v37 = vmax.f32 %v867_v24, 0.0 }
 0x3ec   :  { %v908_v36 = vmax.f32 %v878_v32, 0.0 }
 0x3ed   :  { %v906_v39 = vmax.f32 %v870_v33, 0.0 }
 0x3ee   :  { %v918_v43 = vpack.c.bf16 %v908_v36, %v907_v35 }
 0x3ef   :  { %v917_v44 = vpack.c.bf16 %v906_v39, %v905_v37  ;;  %v2314_v45 = vpop.f32.mrb[32].mxu0  ;;  %v2557_v39 = vld [vmem:[#allocation2 + $0x100] sm:$0xff]  }
 0x3f0   :  { %v891_v48 = vadd.f32 %v2314_v45, %v799_v41  ;;  %v882_v49 = vpop.f32.mrb[33].mxu0 }
 0x3f1   :  { %v883_v26 = vadd.f32 %v882_v49, %v799_v41  ;;  %v2315_v51 = vpop.f32.mrb[34].mxu0  ;;  %2340 = vmatprep.mubr.bf16.mxu1 %v917_v44 }
 0x3f2   :  { %v894_v53 = vadd.f32 %v2315_v51, %v799_v41  ;;  %v885_v21 = vpop.f32.mrb[35].mxu0  ;;  %2341 = vmatmul.mubr.bf16.gmra.mrb[40].mxu1 %v918_v43  ;;  %v911_v56 = vmax.f32 %v891_v48, 0.0  ;;  %v2558_v43 = vld [vmem:[#allocation2 + $0x108] sm:$0xff]  }
 0x3f3   :  { %v886_v55 = vadd.f32 %v885_v21, %v799_v41  ;;  %v909_v58 = vmax.f32 %v883_v26, 0.0 }
 0x3f4   :  { %v912_v57 = vmax.f32 %v894_v53, 0.0 }
 0x3f5   :  { %v910_v59 = vmax.f32 %v886_v55, 0.0 }
 0x3f6   :  { %v920_v60 = vpack.c.bf16 %v912_v57, %v911_v56 }
 0x3f7   :  { %v919_v61 = vpack.c.bf16 %v910_v59, %v909_v58 }
 0x3f9   :  { %2344 = vmatprep.mubr.bf16.mxu1 %v919_v61 }
 0x3fa   :  { %2345 = vmatmul.mubr.bf16.gmra.mrb[44].mxu1 %v920_v60 }
 0x3fb   :  { %2396 = vmatprep.mubr.msk.bf16.mxu1 %vm2657_vm0, %v2656_v0 }
 0x4b5   :  { %v2334_v62 = vpop.f32.mrb[32].mxu1 }
 0x4b6   :  { %v1020_v63 = vpop.f32.mrb[33].mxu1 }
 0x4b7   :  { %v2335_v1 = vpop.f32.mrb[34].mxu1 }
 0x4b8   :  { %v1084_v2 = vpack.c.bf16 %v2335_v1, %v2334_v62  ;;  %v1023_v5 = vpop.f32.mrb[35].mxu1 }
 0x4b9   :  { %v1083_v6 = vpack.c.bf16 %v1023_v5, %v1020_v63 }
 0x4bb   :  { %2348 = vmatprep.subr.bf16.mxu0 %v1083_v6 }
 0x4bc   :  { %2349 = vmatpush3.bf16.msra.mxu0 %v1083_v6 }
 0x4bd   :  { %v2338_v41 = vpop.f32.mrb[36].mxu1  ;;  %2350 = vmatprep.subr.bf16.mxu0 %v1084_v2 }
 0x4be   :  { %v1036_v13 = vpop.f32.mrb[37].mxu1 }
 0x4bf   :  { %v2339_v14 = vpop.f32.mrb[38].mxu1 }
 0x4c0   :  { %v1086_v15 = vpack.c.bf16 %v2339_v14, %v2338_v41  ;;  %v1039_v16 = vpop.f32.mrb[39].mxu1  ;;  %2351 = vmatpush3.bf16.msra.mxu0 %v1084_v2 }
 0x4c1   :  { %v1085_v17 = vpack.c.bf16 %v1039_v16, %v1036_v13 }
 0x4c3   :  { %2352 = vmatprep.subr.bf16.mxu0 %v1085_v17 }
 0x4c4   :  { %2353 = vmatpush3.bf16.msra.mxu0 %v1085_v17 }
 0x4c5   :  { %v2342_v18 = vpop.f32.mrb[40].mxu1  ;;  %2354 = vmatprep.subr.bf16.mxu0 %v1086_v15 }
 0x4c6   :  { %v1052_v19 = vpop.f32.mrb[41].mxu1 }
 0x4c7   :  { %v2343_v20 = vpop.f32.mrb[42].mxu1 }
 0x4c8   :  { %v1088_v23 = vpack.c.bf16 %v2343_v20, %v2342_v18  ;;  %v1055_v24 = vpop.f32.mrb[43].mxu1  ;;  %2355 = vmatpush3.bf16.msra.mxu0 %v1086_v15 }
 0x4c9   :  { %v1087_v31 = vpack.c.bf16 %v1055_v24, %v1052_v19 }
 0x4cb   :  { %2356 = vmatprep.subr.bf16.mxu0 %v1087_v31 }
 0x4cc   :  { %2357 = vmatpush3.bf16.msra.mxu0 %v1087_v31 }
 0x4cd   :  { %v2346_v32 = vpop.f32.mrb[44].mxu1  ;;  %2358 = vmatprep.subr.bf16.mxu0 %v1088_v23 }
 0x4ce   :  { %v1068_v34 = vpop.f32.mrb[45].mxu1 }
 0x4cf   :  { %v2347_v33 = vpop.f32.mrb[46].mxu1 }
 0x4d0   :  { %v1090_v35 = vpack.c.bf16 %v2347_v33, %v2346_v32  ;;  %v1071_v36 = vpop.f32.mrb[47].mxu1  ;;  %2359 = vmatpush3.bf16.msra.mxu0 %v1088_v23 }
 0x4d1   :  { %v1089_v37 = vpack.c.bf16 %v1071_v36, %v1068_v34 }
 0x4d3   :  { %2360 = vmatprep.subr.bf16.mxu0 %v1089_v37 }
 0x4d4   :  { %2361 = vmatpush3.bf16.msra.mxu0 %v1089_v37 }
 0x4d5   :  { %2362 = vmatprep.subr.bf16.mxu0 %v1090_v35 }
 0x4d8   :  { %2363 = vmatpush3.bf16.msra.mxu0 %v1090_v35 }
 0x4d9   :  { %2400 = vmatprep.subr.bf16.mxu0 %v2656_v0 }
 0x4db   :  { %2365 = vmatmul.mubr.bf16.vlgmr.msra.gmra.mrb[36].mxu0 %v2759_v3  ;;  %v2559_v3 = vld [vmem:[#allocation2 + $0x110] sm:$0xff]  }
 0x4dc   :  { %2368 = vmatprep.mubr.bf16.mxu0 %v2764_v4  ;;  %2401 = vmatpush3.bf16.msra.mxu0 %v2557_v39  ;;  %v2560_v4 = vld [vmem:[#allocation2 + $0x118] sm:$0xff]  }
 0x4dd   :  { %2402 = vmatprep.subr.bf16.mxu0 %v2656_v0 }
 0x4e0   :  { %2403 = vmatpush3.bf16.msra.mxu0 %v2558_v43  ;;  %v2556_v43 = vld [vmem:[%s3009_s1 + $0x40] sm:$0xff]  }
 0x4e1   :  { %2404 = vmatprep.subr.bf16.mxu0 %v2656_v0 }
 0x4e3   :  { %2369 = vmatmul.mubr.bf16.gmra.mrb[40].mxu0 %v2771_v7  ;;  %v2561_v7 = vld [vmem:[#allocation2 + $0x120] sm:$0xff]  }
 0x4e4   :  { %2372 = vmatprep.mubr.bf16.mxu0 %v2776_v8  ;;  %2405 = vmatpush3.bf16.msra.mxu0 %v2559_v3  ;;  %v2562_v8 = vld [vmem:[#allocation2 + $0x128] sm:$0xff]   ;;  %v2564_v3 = vld [vmem:[#allocation2 + $0x138] sm:$0xff]  }
 0x4e5   :  { %2406 = vmatprep.subr.bf16.mxu0 %v2656_v0 }
 0x4e8   :  { %2407 = vmatpush3.bf16.msra.mxu0 %v2560_v4  ;;  %v2565_v4 = vld [vmem:[#allocation2 + $0x140] sm:$0xff]  }
 0x4e9   :  { %2408 = vmatprep.subr.bf16.mxu0 %v2656_v0 }
 0x4eb   :  { %2373 = vmatmul.mubr.bf16.gmra.mrb[44].mxu0 %v2783_v9  ;;  %v2563_v9 = vld [vmem:[#allocation2 + $0x130] sm:$0xff]  }
 0x4ec   :  { %2376 = vmatprep.mubr.bf16.mxu0 %v2788_v10  ;;  %2409 = vmatpush3.bf16.msra.mxu0 %v2561_v7  ;;  %v1093_v10 = vsub.s32 5, %v2739_v28  ;;  %v2566_v7 = vld [vmem:[#allocation2 + $0x148] sm:$0xff]  }
 0x4ed   :  { %2410 = vmatprep.subr.bf16.mxu0 %v2656_v0 }
 0x4f0   :  { %2411 = vmatpush3.bf16.msra.mxu0 %v2562_v8  ;;  %v2567_v8 = vld [vmem:[#allocation2 + $0x150] sm:$0xff]  }
 0x4f1   :  { %2412 = vmatprep.subr.bf16.mxu0 %v2656_v0 }
 0x4f3   :  { %2377 = vmatmul.mubr.bf16.gmra.mrb[48].mxu0 %v2795_v11  ;;  %v1094_v11 = vrot.slane %v2745_v30, %v1093_v10 }
 0x4f4   :  { %2416 = vmatprep.mubr.msk.bf16.mxu0 %vm2657_vm0, %v2656_v0  ;;  %2413 = vmatpush3.bf16.msra.mxu0 %v2563_v9  ;;  %v2568_v9 = vld [vmem:[#allocation2 + $0x158] sm:$0xff]  }
 0x4f5   :  { %2414 = vmatprep.subr.bf16.mxu0 %v2656_v0 }
 0x4f8   :  { %2415 = vmatpush3.bf16.msra.mxu0 %v2564_v3 }
 0x4f9   :  { %2440 = vmatprep.subr.bf16.mxu0 %v2656_v0 }
 0x5ae   :  { %v2366_v44 = vpop.f32.mrb[36].mxu0 }
 0x5af   :  { %v1129_v45 = vpop.f32.mrb[37].mxu0  ;;  %v1138_v49 = vadd.f32 %v2366_v44, %v1094_v11  ;;  %v2570_v44 = vld [vmem:[#allocation2 + $0x168] sm:$0xff]  }
 0x5b0   :  { %v2367_v48 = vpop.f32.mrb[38].mxu0  ;;  %v1130_v53 = vadd.f32 %v1129_v45, %v1094_v11 }
 0x5b1   :  { %v1141_v26 = vadd.f32 %v2367_v48, %v1094_v11  ;;  %v1132_v51 = vpop.f32.mrb[39].mxu0 }
 0x5b2   :  { %v1133_v21 = vadd.f32 %v1132_v51, %v1094_v11 }
 0x5b3   :  { %v1193_v55 = vpack.c.bf16 %v1141_v26, %v1138_v49 }
 0x5b4   :  { %v1192_v56 = vpack.c.bf16 %v1133_v21, %v1130_v53  ;;  %v2571_v53 = vld [vmem:[#allocation2 + $0x170] sm:$0xff]   ;;  %v2572_v21 = vld [vmem:[#allocation2 + $0x178] sm:$0xff]  }
 0x5b6   :  { %v2370_v57 = vpop.f32.mrb[40].mxu0  ;;  %2381 = vmatpush3.bf16.msra.mxu1 %v1192_v56  ;;  %v2574_v56 = vld [vmem:[#allocation2 + $0x188] sm:$0xff]  }
 0x5b7   :  { %v1145_v58 = vpop.f32.mrb[41].mxu0  ;;  %2382 = vmatprep.subr.bf16.mxu1 %v2656_v0  ;;  %v1154_v60 = vadd.f32 %v2370_v57, %v1094_v11  ;;  %v2575_v57 = vld [vmem:[#allocation2 + $0x190] sm:$0xff]  }
 0x5b8   :  { %v2371_v59 = vpop.f32.mrb[42].mxu0  ;;  %v1146_v63 = vadd.f32 %v1145_v58, %v1094_v11  ;;  %v2576_v58 = vld [vmem:[#allocation2 + $0x198] sm:$0xff]  }
 0x5b9   :  { %v1157_v61 = vadd.f32 %v2371_v59, %v1094_v11  ;;  %v1148_v62 = vpop.f32.mrb[43].mxu0  ;;  %v2577_v59 = vld [vmem:[#allocation2 + $0x1a0] sm:$0xff]  }
 0x5ba   :  { %v1149_v1 = vadd.f32 %v1148_v62, %v1094_v11  ;;  %2383 = vmatpush3.bf16.msra.mxu1 %v1193_v55  ;;  %v2573_v55 = vld [vmem:[#allocation2 + $0x180] sm:$0xff]  }
 0x5bb   :  { %v1195_v2 = vpack.c.bf16 %v1157_v61, %v1154_v60  ;;  %2384 = vmatprep.subr.bf16.mxu1 %v2656_v0  ;;  %v2578_v60 = vld [vmem:[#allocation2 + $0x1a8] sm:$0xff]   ;;  %v1267_v61 = vsub.s32 6, %v2739_v28 }
 0x5bc   :  { %v1194_v5 = vpack.c.bf16 %v1149_v1, %v1146_v63 }
 0x5bd   :  { %v1268_v62 = vrot.slane %v2745_v30, %v1267_v61  ;;  %v1380_v30 = vsub.s32 7, %v2739_v28 }
 0x5be   :  { %v2374_v6 = vpop.f32.mrb[44].mxu0  ;;  %2385 = vmatpush3.bf16.msra.mxu1 %v1194_v5 }
 0x5bf   :  { %v1161_v41 = vpop.f32.mrb[45].mxu0  ;;  %2386 = vmatprep.subr.bf16.mxu1 %v2656_v0  ;;  %v1170_v14 = vadd.f32 %v2374_v6, %v1094_v11 }
 0x5c0   :  { %v2375_v13 = vpop.f32.mrb[46].mxu0  ;;  %v1162_v17 = vadd.f32 %v1161_v41, %v1094_v11 }
 0x5c1   :  { %v1173_v15 = vadd.f32 %v2375_v13, %v1094_v11  ;;  %v1164_v16 = vpop.f32.mrb[47].mxu0 }
 0x5c2   :  { %v1165_v18 = vadd.f32 %v1164_v16, %v1094_v11  ;;  %2387 = vmatpush3.bf16.msra.mxu1 %v1195_v2  ;;  %v2579_v16 = vld [vmem:[#allocation2 + $0x1b0] sm:$0xff]  }
 0x5c3   :  { %v1197_v19 = vpack.c.bf16 %v1173_v15, %v1170_v14  ;;  %2388 = vmatprep.subr.bf16.mxu1 %v2656_v0 }
 0x5c4   :  { %v1196_v20 = vpack.c.bf16 %v1165_v18, %v1162_v17  ;;  %v2580_v17 = vld [vmem:[#allocation2 + $0x1b8] sm:$0xff]   ;;  %v2627_v18 = vld [vmem:[%s3011_s3] sm:$0xff] }
 0x5c6   :  { %v2378_v23 = vpop.f32.mrb[48].mxu0  ;;  %2389 = vmatpush3.bf16.msra.mxu1 %v1196_v20 }
 0x5c7   :  { %v1177_v24 = vpop.f32.mrb[49].mxu0  ;;  %2390 = vmatprep.subr.bf16.mxu1 %v2656_v0  ;;  %v1186_v32 = vadd.f32 %v2378_v23, %v1094_v11 }
 0x5c8   :  { %v2379_v31 = vpop.f32.mrb[50].mxu0  ;;  %v1178_v35 = vadd.f32 %v1177_v24, %v1094_v11 }
 0x5c9   :  { %v1189_v34 = vadd.f32 %v2379_v31, %v1094_v11  ;;  %v1180_v33 = vpop.f32.mrb[51].mxu0 }
 0x5ca   :  { %v1181_v36 = vadd.f32 %v1180_v33, %v1094_v11  ;;  %2391 = vmatpush3.bf16.msra.mxu1 %v1197_v19  ;;  %v2569_v11 = vld [vmem:[#allocation2 + $0x160] sm:$0xff]   ;;  %v1381_v19 = vrot.slane %v2627_v18, %v1380_v30 }
 0x5cb   :  { %v1199_v37 = vpack.c.bf16 %v1189_v34, %v1186_v32  ;;  %2392 = vmatprep.subr.bf16.mxu1 %v2656_v0 }
 0x5cc   :  { %v1198_v39 = vpack.c.bf16 %v1181_v36, %v1178_v35 }
 0x5ce   :  { %2393 = vmatpush3.bf16.msra.mxu1 %v1198_v39  ;;  %v1494_v39 = vrot.slane %v2802_v12, %v95_v29  ;;  %v2582_v29 = vld [vmem:[#allocation2 + $0x1c8] sm:$0xff]   ;;  %v2584_v12 = vld [vmem:[#allocation2 + $0x1d8] sm:$0xff]  }
 0x5cf   :  { %2394 = vmatprep.subr.bf16.mxu1 %v2656_v0 }
 0x5d2   :  { %2395 = vmatpush3.bf16.msra.mxu1 %v1199_v37  ;;  %v197_v37 = vmul.f32 0.0625, %v2819_v42 }
 0x5d3   :  { %2420 = vmatprep.subr.bf16.mxu1 %v2656_v0 }
 0x5d4   :  { %v2928_v3 = vsub.f32 %v2753_v38, %v197_v37  ;;  %v2583_v38 = vld [vmem:[#allocation2 + $0x1d0] sm:$0xff]  }
 0x5d5   :  { %2397 = vmatmul.mubr.bf16.vlgmr.msra.gmra.mrb[48].mxu1 %v2556_v43 }
 0x5d6   :  { %2436 = vmatprep.mubr.msk.bf16.mxu1 %vm2657_vm0, %v2656_v0  ;;  %2421 = vmatpush3.bf16.msra.mxu1 %v2565_v4 }
 0x5d7   :  { %2422 = vmatprep.subr.bf16.mxu1 %v2656_v0 }
 0x5da   :  { %2423 = vmatpush3.bf16.msra.mxu1 %v2566_v7 }
 0x5db   :  { %2424 = vmatprep.subr.bf16.mxu1 %v2656_v0 }
 0x5de   :  { %2425 = vmatpush3.bf16.msra.mxu1 %v2567_v8 }
 0x5df   :  { %2426 = vmatprep.subr.bf16.mxu1 %v2656_v0 }
 0x5e2   :  { %2427 = vmatpush3.bf16.msra.mxu1 %v2568_v9 }
 0x5e3   :  { %2428 = vmatprep.subr.bf16.mxu1 %v2656_v0 }
 0x5e6   :  { %2429 = vmatpush3.bf16.msra.mxu1 %v2569_v11 }
 0x5e7   :  { %2430 = vmatprep.subr.bf16.mxu1 %v2656_v0 }
 0x5ea   :  { %2431 = vmatpush3.bf16.msra.mxu1 %v2570_v44  ;;  %v201_v44 = vmul.f32 %v2928_v3, %v2928_v3 }
 0x5eb   :  { %2432 = vmatprep.subr.bf16.mxu1 %v2656_v0 }
 0x5ec   :  { %v203_v42 = vmul.f32 %v2810_v22, %v201_v44 }
 0x5ee   :  { %2433 = vmatpush3.bf16.msra.mxu1 %v2571_v53 }
 0x5ef   :  { %2434 = vmatprep.subr.bf16.mxu1 %v2656_v0 }
 0x5f2   :  { %2435 = vmatpush3.bf16.msra.mxu1 %v2572_v21 }
 0x5f3   :  { %2460 = vmatprep.subr.bf16.mxu1 %v2656_v0 }
 0x6a8   :  { %v1240_v45 = vpop.f32.mrb[48].mxu1 }
 0x6a9   :  { %v2398_v48 = vpop.f32.mrb[49].mxu1 }
 0x6aa   :  { %v1243_v49 = vpop.f32.mrb[50].mxu1  ;;  %v2585_v48 = vld [vmem:[#allocation2 + $0x1e0] sm:$0xff]  }
 0x6ab   :  { %v1247_v26 = vpack.c.bf16 %v1243_v49, %v1240_v45  ;;  %v2399_v51 = vpop.f32.mrb[51].mxu1  ;;  %v2581_v45 = vld [vmem:[#allocation2 + $0x1c0] sm:$0xff]   ;;  %v2586_v49 = vld [vmem:[#allocation2 + $0x1e8] sm:$0xff]  }
 0x6ac   :  { %v2588_v51 = vld [vmem:[#allocation2 + $0x1f8] sm:$0xff]  }
 0x6ad   :  { %2417 = vmatmul.mubr.bf16.vlgmr.msra.gmra.mrb[52].mxu0 %v1247_v26  ;;  %v2587_v26 = vld [vmem:[#allocation2 + $0x1f0] sm:$0xff]  }
 0x6ae   :  { %2456 = vmatprep.mubr.msk.bf16.mxu0 %vm2657_vm0, %v2656_v0  ;;  %2441 = vmatpush3.bf16.msra.mxu0 %v2573_v55 }
 0x6af   :  { %2442 = vmatprep.subr.bf16.mxu0 %v2656_v0 }
 0x6b2   :  { %2443 = vmatpush3.bf16.msra.mxu0 %v2574_v56 }
 0x6b3   :  { %2444 = vmatprep.subr.bf16.mxu0 %v2656_v0 }
 0x6b6   :  { %2445 = vmatpush3.bf16.msra.mxu0 %v2575_v57 }
 0x6b7   :  { %2446 = vmatprep.subr.bf16.mxu0 %v2656_v0 }
 0x6ba   :  { %2447 = vmatpush3.bf16.msra.mxu0 %v2576_v58 }
 0x6bb   :  { %2448 = vmatprep.subr.bf16.mxu0 %v2656_v0 }
 0x6be   :  { %2449 = vmatpush3.bf16.msra.mxu0 %v2577_v59 }
 0x6bf   :  { %2450 = vmatprep.subr.bf16.mxu0 %v2656_v0 }
 0x6c2   :  { %2451 = vmatpush3.bf16.msra.mxu0 %v2578_v60 }
 0x6c3   :  { %2452 = vmatprep.subr.bf16.mxu0 %v2656_v0 }
 0x6c6   :  { %2453 = vmatpush3.bf16.msra.mxu0 %v2579_v16 }
 0x6c7   :  { %2454 = vmatprep.subr.bf16.mxu0 %v2656_v0 }
 0x6ca   :  { %2455 = vmatpush3.bf16.msra.mxu0 %v2580_v17 }
 0x6cb   :  { %2480 = vmatprep.subr.bf16.mxu0 %v2656_v0 }
 0x780   :  { %v1351_v63 = vpop.f32.mrb[52].mxu0 }
 0x781   :  { %v1352_v1 = vadd.f32 %v1351_v63, %v1268_v62  ;;  %v2418_v2 = vpop.f32.mrb[53].mxu0 }
 0x782   :  { %v1354_v5 = vpop.f32.mrb[54].mxu0 }
 0x783   :  { %v1355_v6 = vadd.f32 %v1354_v5, %v1268_v62  ;;  %v2419_v41 = vpop.f32.mrb[55].mxu0  ;;  %v1358_v13 = vmax.f32 %v1352_v1, 0.0 }
 0x785   :  { %v1359_v14 = vmax.f32 %v1355_v6, 0.0 }
 0x787   :  { %v1360_v15 = vpack.c.bf16 %v1359_v14, %v1358_v13 }
 0x789   :  { %2437 = vmatmul.mubr.bf16.vlgmr.msra.gmra.mrb[52].mxu1 %v1360_v15 }
 0x78a   :  { %2476 = vmatprep.mubr.msk.bf16.mxu1 %vm2657_vm0, %v2656_v0  ;;  %2461 = vmatpush3.bf16.msra.mxu1 %v2581_v45 }
 0x78b   :  { %2462 = vmatprep.subr.bf16.mxu1 %v2656_v0 }
 0x78e   :  { %2463 = vmatpush3.bf16.msra.mxu1 %v2582_v29 }
 0x78f   :  { %2464 = vmatprep.subr.bf16.mxu1 %v2656_v0 }
 0x792   :  { %2465 = vmatpush3.bf16.msra.mxu1 %v2583_v38 }
 0x793   :  { %2466 = vmatprep.subr.bf16.mxu1 %v2656_v0 }
 0x796   :  { %2467 = vmatpush3.bf16.msra.mxu1 %v2584_v12 }
 0x797   :  { %2468 = vmatprep.subr.bf16.mxu1 %v2656_v0 }
 0x79a   :  { %2469 = vmatpush3.bf16.msra.mxu1 %v2585_v48 }
 0x79b   :  { %2470 = vmatprep.subr.bf16.mxu1 %v2656_v0 }
 0x79e   :  { %2471 = vmatpush3.bf16.msra.mxu1 %v2586_v49 }
 0x79f   :  { %2472 = vmatprep.subr.bf16.mxu1 %v2656_v0 }
 0x7a2   :  { %2473 = vmatpush3.bf16.msra.mxu1 %v2587_v26 }
 0x7a3   :  { %2474 = vmatprep.subr.bf16.mxu1 %v2656_v0 }
 0x7a6   :  { %2475 = vmatpush3.bf16.msra.mxu1 %v2588_v51 }
 0x85c   :  { %v1464_v20 = vpop.f32.mrb[52].mxu1 }
 0x85d   :  { %v1465_v23 = vadd.f32 %v1464_v20, %v1381_v19  ;;  %v2438_v24 = vpop.f32.mrb[53].mxu1 }
 0x85e   :  { %v1467_v31 = vpop.f32.mrb[54].mxu1 }
 0x85f   :  { %v1468_v32 = vadd.f32 %v1467_v31, %v1381_v19  ;;  %v2439_v34 = vpop.f32.mrb[55].mxu1  ;;  %v1471_v33 = vmax.f32 %v1465_v23, 0.0 }
 0x861   :  { %v1472_v35 = vmax.f32 %v1468_v32, 0.0 }
 0x863   :  { %v1473_v36 = vpack.c.bf16 %v1472_v35, %v1471_v33 }
 0x865   :  { %2457 = vmatmul.mubr.bf16.vlgmr.msra.gmra.mrb[56].mxu0 %v1473_v36 }
 0x866   :  { %2496 = vmatprep.mubr.msk.bf16.mxu0 %vm2657_vm0, %v2656_v0  ;;  %2481 = vmatpush3.bf16.msra.mxu0 %v2581_v45 }
 0x867   :  { %2482 = vmatprep.subr.bf16.mxu0 %v2656_v0 }
 0x86a   :  { %2483 = vmatpush3.bf16.msra.mxu0 %v2582_v29 }
 0x86b   :  { %2484 = vmatprep.subr.bf16.mxu0 %v2656_v0 }
 0x86e   :  { %2485 = vmatpush3.bf16.msra.mxu0 %v2583_v38 }
 0x86f   :  { %2486 = vmatprep.subr.bf16.mxu0 %v2656_v0 }
 0x872   :  { %2487 = vmatpush3.bf16.msra.mxu0 %v2584_v12 }
 0x873   :  { %2488 = vmatprep.subr.bf16.mxu0 %v2656_v0 }
 0x876   :  { %2489 = vmatpush3.bf16.msra.mxu0 %v2585_v48 }
 0x877   :  { %2490 = vmatprep.subr.bf16.mxu0 %v2656_v0 }
 0x87a   :  { %2491 = vmatpush3.bf16.msra.mxu0 %v2586_v49 }
 0x87b   :  { %2492 = vmatprep.subr.bf16.mxu0 %v2656_v0 }
 0x87e   :  { %2493 = vmatpush3.bf16.msra.mxu0 %v2587_v26 }
 0x87f   :  { %2494 = vmatprep.subr.bf16.mxu0 %v2656_v0 }
 0x882   :  { %2495 = vmatpush3.bf16.msra.mxu0 %v2588_v51 }
 0x938   :  { %v1577_v43 = vpop.f32.mrb[56].mxu0 }
 0x939   :  { %v1578_v4 = vadd.f32 %v1577_v43, %v1494_v39  ;;  %v2458_v7 = vpop.f32.mrb[57].mxu0 }
 0x93a   :  { %v1580_v8 = vpop.f32.mrb[58].mxu0 }
 0x93b   :  { %1584 = vadd.xlane.f32.xlu1 %v1578_v4  ;;  %v2459_v9 = vpop.f32.mrb[59].mxu0  ;;  %v1581_v11 = vadd.f32 %v1580_v8, %v1494_v39 }
 0x93f   :  { %1586 = vadd.xlane.f32.xlu1 %v1581_v11 }
 0x943   :  { %206 = vadd.xlane.f32.xlu1 %v203_v42 }
 0x9c8   :  { %v1585_v53 = vpop.xlane.xlu1 %1584 }
 0x9c9   :  { %v1588_v21 = vmul.f32 0.0625, %v1585_v53 }
 0x9cb   :  { %v1590_v55 = vsub.f32 %v1578_v4, %v1588_v21  ;;  %v2976_v4 = vsel %vm1625_vm2, 1.0, %v2656_v0 }
 0x9cc   :  { %v1587_v56 = vpop.xlane.xlu1 %1586 }
 0x9cd   :  { %v1589_v57 = vmul.f32 0.0625, %v1587_v56  ;;  %v1592_v58 = vmul.f32 %v1590_v55, %v1590_v55 }
 0x9cf   :  { %v1591_v59 = vsub.f32 %v1581_v11, %v1589_v57  ;;  %v1594_v60 = vmul.f32 %v2810_v22, %v1592_v58 }
 0x9d0   :  { %v207_v61 = vpop.xlane.xlu1 %206 }
 0x9d1   :  { %v209_v62 = vmul.f32 0.0625, %v207_v61  ;;  %1596 = vadd.xlane.f32.xlu0 %v1594_v60  ;;  %v1593_v63 = vmul.f32 %v1591_v59, %v1591_v59 }
 0x9d3   :  { %v211_v1 = vadd.f32 1e-05, %v209_v62  ;;  %v1595_v2 = vmul.f32 %v2810_v22, %v1593_v63 }
 0x9d5   :  { %2593 = vrsqrt.f32 %v211_v1  ;;  %1598 = vadd.xlane.f32.xlu1 %v1595_v2 }
 0x9df   :  { %v2594_v5 = vpop.eup %2593 }
 0x9e0   :  { %v215_v6 = vmul.f32 %v2594_v5, %v2928_v3 }
 0x9e2   :  { %v221_v41 = vmul.f32 %v2826_v27, %v215_v6  ;;  %v2628_v27 = vld [vmem:[%s3011_s3 + $0x8] sm:$0xff] }
 0x9e3   :  { %v1617_v20 = vrot.slane %v2628_v27, %v224_v47  ;;  %v1652_v47 = vrot.slane %v2628_v27, %v455_v25  ;;  %v1773_v1 = vrot.slane %v2628_v27, %v798_v40 }
 0x9e4   :  { %v227_v13 = vadd.f32 %v2832_v50, %v221_v41  ;;  %v1611_v50 = vrot.slane %v2628_v27, %v218_v46  ;;  %v1779_v41 = vrot.slane %v2628_v27, %v1093_v10 }
 0x9e6   :  { %v234_v14 = vmul.f32 %v2835_v52, %v227_v13 }
 0x9e8   :  { %v1648_v15 = vpack.c.bf16 %v234_v14, %v2839_v54  ;;  %1917 = vst [vmem:[%s3012_s4 + $0x28] sm:$0xff] %v234_v14 }
 0x9ea   :  { %2477 = vmatmul.mubr.bf16.vlgmr.msra.gmra.mrb[56].mxu1 %v1648_v15 }
 0xa5e   :  { %v1597_v16 = vpop.xlane.xlu0 %1596 }
 0xa5f   :  { %v1600_v22 = vmul.f32 0.0625, %v1597_v16 }
 0xa61   :  { %v1602_v17 = vadd.f32 1e-05, %v1600_v22 }
 0xa62   :  { %v1599_v30 = vpop.xlane.xlu1 %1598 }
 0xa63   :  { %2595 = vrsqrt.f32 %v1602_v17  ;;  %v1601_v18 = vmul.f32 0.0625, %v1599_v30 }
 0xa65   :  { %v1603_v19 = vadd.f32 1e-05, %v1601_v18 }
 0xa67   :  { %2597 = vrsqrt.f32 %v1603_v19 }
 0xa6d   :  { %v2596_v54 = vpop.eup %2595 }
 0xa6e   :  { %v1606_v23 = vmul.f32 %v2596_v54, %v1590_v55 }
 0xa70   :  { %v1612_v24 = vmul.f32 %v1611_v50, %v1606_v23 }
 0xa71   :  { %v2598_v31 = vpop.eup %2597 }
 0xa72   :  { %v1607_v32 = vmul.f32 %v2598_v31, %v1591_v59  ;;  %v1618_v34 = vadd.f32 %v1617_v20, %v1612_v24 }
 0xa74   :  { %v1613_v33 = vmul.f32 %v1611_v50, %v1607_v32  ;;  %v1620_v35 = vmul.f32 %v1618_v34, %v2835_v52 }
 0xa76   :  { %v1619_v36 = vadd.f32 %v1617_v20, %v1613_v33  ;;  %1918 = vst [vmem:[%s3012_s4 + $0x30] sm:$0xff] %v1620_v35 }
 0xa78   :  { %v1621_v37 = vmul.f32 %v1619_v36, %v2835_v52 }
 0xa7a   :  { %v1812_v46 = vpack.c.bf16 %v1621_v37, %v1620_v35  ;;  %1919 = vst [vmem:[%s3012_s4 + $0x38] sm:$0xff] %v1621_v37 }
 0xa7c   :  { %2497 = vmatmul.mubr.bf16.vlgmr.msra.gmra.mrb[60].mxu0 %v1812_v46 }
 0xabd   :  { %v1735_v39 = vpop.f32.mrb[56].mxu1 }
 0xabe   :  { %v1736_v43 = vadd.f32 %v1735_v39, %v1652_v47  ;;  %v2478_v3 = vpop.f32.mrb[57].mxu1 }
 0xabf   :  { %v1738_v7 = vpop.f32.mrb[58].mxu1 }
 0xac0   :  { %v1739_v8 = vadd.f32 %v1738_v7, %v1652_v47  ;;  %v2479_v52 = vpop.f32.mrb[59].mxu1  ;;  %v1742_v9 = vmul.f32 %v2976_v4, %v1736_v43 }
 0xac2   :  { %v1743_v11 = vmul.f32 0.0, %v1739_v8 }
 0xac4   :  { %v1744_v44 = vadd.f32 %v1743_v11, %v1742_v9 }
 0xac6   :  { %v1745_v42 = vrot.slane %v1744_v44, 4 }
 0xac8   :  { %v1746_v45 = vadd.f32 %v1745_v42, %v1744_v44 }
 0xaca   :  { %v1747_v29 = vrot.slane %v1746_v45, 2 }
 0xacc   :  { %v1748_v38 = vadd.f32 %v1747_v29, %v1746_v45 }
 0xace   :  { %v1749_v25 = vrot.slane %v1748_v38, 1 }
 0xad0   :  { %v1750_v12 = vadd.f32 %v1749_v25, %v1748_v38 }
 0xad2   :  { %v1751_v48 = vmul.f32 0.5, %v1750_v12 }
 0xad4   :  { %v1752_v49 = vsub.f32 %v1736_v43, %v1751_v48  ;;  %v1753_v26 = vsub.f32 %v1739_v8, %v1751_v48 }
 0xad6   :  { %v1754_v51 = vmul.f32 %v1752_v49, %v1752_v49  ;;  %v1755_v53 = vmul.f32 %v1753_v26, %v1753_v26 }
 0xad8   :  { %v1756_v0 = vmul.f32 %v2976_v4, %v1754_v51  ;;  %v1757_v21 = vmul.f32 0.0, %v1755_v53 }
 0xada   :  { %v1758_v55 = vadd.f32 %v1757_v21, %v1756_v0 }
 0xadc   :  { %v1759_v56 = vrot.slane %v1758_v55, 4 }
 0xade   :  { %v1760_v57 = vadd.f32 %v1759_v56, %v1758_v55 }
 0xae0   :  { %v1761_v58 = vrot.slane %v1760_v57, 2 }
 0xae2   :  { %v1762_v59 = vadd.f32 %v1761_v58, %v1760_v57 }
 0xae4   :  { %v1763_v60 = vrot.slane %v1762_v59, 1 }
 0xae6   :  { %v1764_v61 = vadd.f32 %v1763_v60, %v1762_v59 }
 0xae8   :  { %v1765_v62 = vmul.f32 0.5, %v1764_v61 }
 0xaea   :  { %v1766_v63 = vadd.f32 1e-05, %v1765_v62 }
 0xaec   :  { %2599 = vrsqrt.f32 %v1766_v63 }
 0xaf6   :  { %v2600_v2 = vpop.eup %2599 }
 0xaf7   :  { %v1768_v5 = vmul.f32 %v2600_v2, %v1752_v49  ;;  %v1769_v6 = vmul.f32 %v2600_v2, %v1753_v26 }
 0xaf9   :  { %v1774_v13 = vmul.f32 %v1773_v1, %v1768_v5  ;;  %v1775_v14 = vmul.f32 %v1773_v1, %v1769_v6 }
 0xafb   :  { %v1780_v15 = vadd.f32 %v1779_v41, %v1774_v13  ;;  %v1781_v16 = vadd.f32 %v1779_v41, %v1775_v14 }
 0xafd   :  { %2601 = vtanh.f32 %v1781_v16 }
 0xafe   :  { %2603 = vtanh.f32 %v1780_v15 }
 0xb07   :  { %v2984_v22 = vpop.eup %2601 }
 0xb08   :  { %v2986_v17 = vpop.eup %2603  ;;  %v1785_v30 = vmul.f32 %v2984_v22, %v2984_v22 }
 0xb09   :  { %v1784_v40 = vmul.f32 %v2986_v17, %v2986_v17 }
 0xb0a   :  { %1788 = vadd.xlane.f32.xlu1 %v1785_v30 }
 0xb0b   :  { %1786 = vadd.xlane.f32.xlu0 %v1784_v40 }
 0xb4f   :  { %v1847_v28 = vpop.f32.mrb[60].mxu0 }
 0xb50   :  { %v1848_v10 = vadd.f32 %v1847_v28, %v1652_v47  ;;  %v2498_v18 = vpop.f32.mrb[61].mxu0 }
 0xb51   :  { %v1850_v19 = vpop.f32.mrb[62].mxu0 }
 0xb52   :  { %v1851_v27 = vadd.f32 %v1850_v19, %v1652_v47  ;;  %v2499_v50 = vpop.f32.mrb[63].mxu0  ;;  %v1854_v54 = vmul.f32 %v2976_v4, %v1848_v10 }
 0xb54   :  { %v1855_v20 = vmul.f32 0.0, %v1851_v27 }
 0xb56   :  { %v1856_v23 = vadd.f32 %v1855_v20, %v1854_v54 }
 0xb58   :  { %v1857_v24 = vrot.slane %v1856_v23, 4 }
 0xb5a   :  { %v1858_v31 = vadd.f32 %v1857_v24, %v1856_v23 }
 0xb5c   :  { %v1859_v32 = vrot.slane %v1858_v31, 2 }
 0xb5e   :  { %v1860_v34 = vadd.f32 %v1859_v32, %v1858_v31 }
 0xb60   :  { %v1861_v33 = vrot.slane %v1860_v34, 1 }
 0xb62   :  { %v1862_v35 = vadd.f32 %v1861_v33, %v1860_v34 }
 0xb64   :  { %v1863_v36 = vmul.f32 0.5, %v1862_v35 }
 0xb66   :  { %v1864_v37 = vsub.f32 %v1848_v10, %v1863_v36  ;;  %v1865_v46 = vsub.f32 %v1851_v27, %v1863_v36 }
 0xb68   :  { %v1866_v39 = vmul.f32 %v1864_v37, %v1864_v37  ;;  %v1867_v43 = vmul.f32 %v1865_v46, %v1865_v46 }
 0xb6a   :  { %v1868_v3 = vmul.f32 %v2976_v4, %v1866_v39  ;;  %v1869_v7 = vmul.f32 0.0, %v1867_v43 }
 0xb6c   :  { %v1870_v47 = vadd.f32 %v1869_v7, %v1868_v3 }
 0xb6e   :  { %v1871_v8 = vrot.slane %v1870_v47, 4 }
 0xb70   :  { %v1872_v52 = vadd.f32 %v1871_v8, %v1870_v47 }
 0xb72   :  { %v1873_v9 = vrot.slane %v1872_v52, 2 }
 0xb74   :  { %v1874_v11 = vadd.f32 %v1873_v9, %v1872_v52 }
 0xb76   :  { %v1875_v44 = vrot.slane %v1874_v11, 1 }
 0xb78   :  { %v1876_v42 = vadd.f32 %v1875_v44, %v1874_v11 }
 0xb7a   :  { %v1877_v45 = vmul.f32 0.5, %v1876_v42 }
 0xb7c   :  { %v1878_v29 = vadd.f32 1e-05, %v1877_v45 }
 0xb7e   :  { %2605 = vrsqrt.f32 %v1878_v29 }
 0xb88   :  { %v2606_v38 = vpop.eup %2605 }
 0xb89   :  { %v1880_v25 = vmul.f32 %v2606_v38, %v1864_v37  ;;  %v1881_v12 = vmul.f32 %v2606_v38, %v1865_v46 }
 0xb8b   :  { %v1882_v48 = vmul.f32 %v1880_v25, %v1773_v1  ;;  %v1883_v49 = vmul.f32 %v1881_v12, %v1773_v1 }
 0xb8d   :  { %v1884_v26 = vadd.f32 %v1882_v48, %v1779_v41  ;;  %v1885_v51 = vadd.f32 %v1883_v49, %v1779_v41 }
 0xb8f   :  { %2607 = vtanh.f32 %v1885_v51 }
 0xb90   :  { %2609 = vtanh.f32 %v1884_v26 }
 0xb97   :  { %v1789_v4 = vpop.xlane.xlu1 %1788 }
 0xb98   :  { %2611 = vrsqrt.f32 %v1789_v4  ;;  %v1787_v53 = vpop.xlane.xlu0 %1786  ;;  %vm1799_vm3 = vcmp.eq.f32.partialorder %v1789_v4, inf  ;;  %v1802_v60 = vand.u32 2147483648, %v1789_v4  ;;  %vm1801_vm4 = vcmp.eq.f32.partialorder %v1789_v4, 0.0 }
 0xb99   :  { %v2608_v0 = vpop.eup %2607  ;;  %2613 = vrsqrt.f32 %v1787_v53  ;;  %vm1792_vm5 = vcmp.eq.f32.partialorder %v1787_v53, inf  ;;  %v1795_v63 = vand.u32 2147483648, %v1787_v53  ;;  %vm1794_vm6 = vcmp.eq.f32.partialorder %v1787_v53, 0.0 }
 0xb9a   :  { %v2610_v21 = vpop.eup %2609  ;;  %v1889_v55 = vmul.f32 %v2608_v0, %v2608_v0 }
 0xb9b   :  { %v1888_v56 = vmul.f32 %v2610_v21, %v2610_v21 }
 0xb9c   :  { %1892 = vadd.xlane.f32.xlu1 %v1889_v55 }
 0xb9d   :  { %1890 = vadd.xlane.f32.xlu0 %v1888_v56 }
 0xba2   :  { %v2612_v57 = vpop.eup %2611 }
 0xba3   :  { %v2614_v58 = vpop.eup %2613  ;;  %v1798_v59 = vmul.f32 %v2612_v57, %v1789_v4 }
 0xba4   :  { %v1791_v61 = vmul.f32 %v2614_v58, %v1787_v53 }
 0xba5   :  { %v1800_v62 = vsel %vm1799_vm3, %v1789_v4, %v1798_v59 }
 0xba6   :  { %v1803_v1 = vsel %vm1801_vm4, %v1802_v60, %v1800_v62  ;;  %v1793_v2 = vsel %vm1792_vm5, %v1787_v53, %v1791_v61 }
 0xba7   :  { %v1805_v5 = vmax.f32 %v1803_v1, 1e-12  ;;  %v1796_v6 = vsel %vm1794_vm6, %v1795_v63, %v1793_v2 }
 0xba8   :  { %v1804_v41 = vmax.f32 %v1796_v6, 1e-12 }
 0xba9   :  { %2615 = vrcp.f32 %v1805_v5 }
 0xbaa   :  { %2617 = vrcp.f32 %v1804_v41 }
 0xbb3   :  { %v2616_v13 = vpop.eup %2615 }
 0xbb4   :  { %v2618_v14 = vpop.eup %2617  ;;  %v1809_v15 = vmul.f32 %v2616_v13, %v2984_v22 }
 0xbb5   :  { %v1807_v16 = vmul.f32 %v2618_v14, %v2986_v17 }
 0xbb6   :  { %1811 = vst [vmem:[%s3012_s4 + $0x8] sm:$0xff] %v1809_v15 }
 0xbb7   :  { %1810 = vst [vmem:[%s3012_s4] sm:$0xff] %v1807_v16 }
 0xc29   :  { %v1893_v30 = vpop.xlane.xlu1 %1892 }
 0xc2a   :  { %2619 = vrsqrt.f32 %v1893_v30  ;;  %v1891_v40 = vpop.xlane.xlu0 %1890  ;;  %vm1903_vm7 = vcmp.eq.f32.partialorder %v1893_v30, inf  ;;  %v1906_v19 = vand.u32 2147483648, %v1893_v30  ;;  %vm1905_vm8 = vcmp.eq.f32.partialorder %v1893_v30, 0.0 }
 0xc2b   :  { %2621 = vrsqrt.f32 %v1891_v40  ;;  %vm1896_vm9 = vcmp.eq.f32.partialorder %v1891_v40, inf  ;;  %v1899_v17 = vand.u32 2147483648, %v1891_v40  ;;  %vm1898_vm10 = vcmp.eq.f32.partialorder %v1891_v40, 0.0 }
 0xc34   :  { %v2620_v28 = vpop.eup %2619 }
 0xc35   :  { %v2622_v10 = vpop.eup %2621  ;;  %v1902_v18 = vmul.f32 %v2620_v28, %v1893_v30 }
 0xc36   :  { %v1895_v22 = vmul.f32 %v2622_v10, %v1891_v40 }
 0xc37   :  { %v1904_v27 = vsel %vm1903_vm7, %v1893_v30, %v1902_v18 }
 0xc38   :  { %v1907_v50 = vsel %vm1905_vm8, %v1906_v19, %v1904_v27  ;;  %v1897_v54 = vsel %vm1896_vm9, %v1891_v40, %v1895_v22 }
 0xc39   :  { %v1909_v20 = vmax.f32 %v1907_v50, 1e-12  ;;  %v1900_v23 = vsel %vm1898_vm10, %v1899_v17, %v1897_v54 }
 0xc3a   :  { %v1908_v24 = vmax.f32 %v1900_v23, 1e-12 }
 0xc3b   :  { %2623 = vrcp.f32 %v1909_v20 }
 0xc3c   :  { %2625 = vrcp.f32 %v1908_v24 }
 0xc45   :  { %v2624_v31 = vpop.eup %2623 }
 0xc46   :  { %v2626_v32 = vpop.eup %2625  ;;  %v1913_v34 = vmul.f32 %v2624_v31, %v2608_v0 }
 0xc47   :  { %v1911_v33 = vmul.f32 %v2626_v32, %v2610_v21 }
 0xc48   :  { %1915 = vst [vmem:[%s3012_s4 + $0x18] sm:$0xff] %v1913_v34 }
 0xc49   :  { %1914 = vst [vmem:[%s3012_s4 + $0x10] sm:$0xff] %v1911_v33 }
 0xc4a   :  { %1924 = vsyncpa [#allocation3], 1 }

</bundles_post_ra>
